<compile_context>
chip_gen: v7x
topology: tpu7x:2x2x1
jax: 0.10.0
libtpu: 0.0.40
codegen_flags: <defaults>
</compile_context>

<pallas_src>
import jax
import jax.numpy as jnp
from jax import lax
from jax.experimental import pallas as pl
from jax.experimental.pallas import tpu as pltpu


def _round_up(x, m):
    return ((x + m - 1) // m) * m if m > 0 else x


def _pick_tile(n, pref, align):
    """Tile size (<= pref, aligned) and padded extent (multiple of the tile)."""
    t = min(pref, _round_up(n, align))
    return t, _round_up(n, t)


def _vmem_capacity_bytes():
    try:
        cap = getattr(pltpu.get_tpu_info(), "vmem_capacity_bytes", None)
        if cap:
            return int(cap)
    except Exception:
        pass
    return 64 * 2 ** 20   # conservative (v7x per-TC VMEM)


def _make_kernel(h, w, r, eps, hp, wp, TH, TW, r_pad, c_pad, mm_dtype):
    KH = TH + 2 * r_pad          # row-pass contraction (band slab height)
    KW = TW + 2 * c_pad          # col-pass contraction (band slab width)
    hin = hp + 2 * r_pad
    win = wp + 2 * c_pad
    n_th = hp // TH
    n_tw = wp // TW
    f32 = jnp.float32

    def kernel(i_ref, p_ref, o_ref, pad_ref, b0, b1, b2):
        # Zero the a/b staging buffer every step (margins must be zero so the
        # clamped-window sums of a/b see zeros outside the image; done per
        # step so every megacore/TC partition is initialized).
        pad_ref[...] = jnp.zeros_like(pad_ref)

        # Factorized 1/N: per-row and per-column reciprocal in-bounds counts.
        # Zero on padded rows/cols => a, b are exactly 0 in the padded region.
        row = lax.broadcasted_iota(jnp.int32, (hp, 1), 0)
        cnt_h = jnp.minimum(row + r, h - 1) - jnp.maximum(row - r, 0) + 1
        inv_nh = jnp.where(row < h, 1.0 / jnp.maximum(cnt_h, 1).astype(f32), 0.0)
        col = lax.broadcasted_iota(jnp.int32, (1, wp), 1)
        cnt_w = jnp.minimum(col + r, w - 1) - jnp.maximum(col - r, 0) + 1
        inv_nw = jnp.where(col < w, 1.0 / jnp.maximum(cnt_w, 1).astype(f32), 0.0)

        # Block-invariant band slabs, generated on-chip (0/1, exact in bf16).
        bi = lax.broadcasted_iota(jnp.int32, (TH, KH), 0)
        bk = lax.broadcasted_iota(jnp.int32, (TH, KH), 1)
        band_h32 = (jnp.abs(bi - (bk - r_pad)) <= r).astype(f32)
        ck = lax.broadcasted_iota(jnp.int32, (KW, TW), 0)
        cj = lax.broadcasted_iota(jnp.int32, (KW, TW), 1)
        band_w32 = (jnp.abs((ck - c_pad) - cj) <= r).astype(f32)
        band_h_mm = band_h32.astype(mm_dtype)
        band_w_mm = band_w32.astype(mm_dtype)

        def rows(t):
            return slice(t * TH, (t + 1) * TH)

        def cols(s):
            return slice(s * TW, (s + 1) * TW)

        def in_rows(t):
            return slice(t * TH, t * TH + KH)

        def box_mean(load_slab, write_block, bh, bw, dtype):
            # Separable clamped-window box mean, block-banded:
            #   row pass: (TH, KH) @ (KH, win)   (only the nonzero band slab)
            #   col pass: (TH, KW) @ (KW, TW)
            # All slice offsets/sizes are multiples of (8, 128) -> no
            # tile-boundary-crossing copies.
            for t in range(n_th):
                s1 = jnp.dot(bh, load_slab(t), preferred_element_type=f32)
                inv_h_t = inv_nh[rows(t), :]
                for s in range(n_tw):
                    seg = s1[:, s * TW:s * TW + KW].astype(dtype)
                    bs = jnp.dot(seg, bw, preferred_element_type=f32)
                    write_block(t, s, bs * inv_h_t * inv_nw[:, cols(s)])

        # ---- source slabs (zero-padded rows/cols contribute exact zeros) ----
        def i_slab(t):
            return i_ref[0, in_rows(t), :]

        def p_slab(t):
            return p_ref[0, in_rows(t), :]

        def ip_slab(t):
            return i_slab(t) * p_slab(t)

        def ii_slab(t):
            x = i_slab(t)
            return x * x

        def ab_slab(t):
            return pad_ref[in_rows(t), :].astype(mm_dtype)

        # ---- per-block write callbacks (fused statistics, 3 (hp,wp) bufs) ----
        def w_mean_i(t, s, m):
            b0[rows(t), cols(s)] = m                       # mean_I

        def w_mean_p(t, s, m):
            b1[rows(t), cols(s)] = m                       # mean_p

        def w_cov(t, s, m):                                # cov_Ip
            b2[rows(t), cols(s)] = m - b0[rows(t), cols(s)] * b1[rows(t), cols(s)]

        def w_a_b(t, s, m):                                # a -> pad, b -> b2
            mi = b0[rows(t), cols(s)]
            mp = b1[rows(t), cols(s)]
            cov = b2[rows(t), cols(s)]
            var = m - mi * mi
            a = cov * pl.reciprocal(var + eps, approx=True)
            pad_ref[r_pad + t * TH:r_pad + (t + 1) * TH,
                    c_pad + s * TW:c_pad + (s + 1) * TW] = a
            b2[rows(t), cols(s)] = mp - a * mi

        def w_mean_a(t, s, m):                             # mean_I is dead now
            b0[rows(t), cols(s)] = m

        def w_out(t, s, m):                                # q = mean_a*I + mean_b
            ic = i_ref[0, r_pad + t * TH:r_pad + (t + 1) * TH,
                       c_pad + s * TW:c_pad + (s + 1) * TW]
            o_ref[0, rows(t), cols(s)] = (b0[rows(t), cols(s)] * ic + m
                                          ).astype(o_ref.dtype)

        # ---- pass 1: always f32 on the MXU (protects var/cov cancellation) ----
        box_mean(i_slab, w_mean_i, band_h32, band_w32, f32)
        box_mean(p_slab, w_mean_p, band_h32, band_w32, f32)
        box_mean(ip_slab, w_cov, band_h32, band_w32, f32)
        box_mean(ii_slab, w_a_b, band_h32, band_w32, f32)

        # ---- pass 2: smooth a and b in matmul_dtype (default bf16) ----
        box_mean(ab_slab, w_mean_a, band_h_mm, band_w_mm, mm_dtype)
        pad_ref[r_pad:r_pad + hp, c_pad:c_pad + wp] = b2[...]   # stage b
        box_mean(ab_slab, w_out, band_h_mm, band_w_mm, mm_dtype)

    return kernel


def guided_filter(I, p, r=40, eps=1e-3, matmul_dtype=jnp.bfloat16):
    """I, p: NCHW float32 arrays in [0, 1]. Returns NCHW float32."""
    assert I.shape == p.shape and I.ndim == 4
    n, c, h, w = I.shape
    nc = n * c
    I = I.astype(jnp.float32)
    p = p.astype(jnp.float32)

    # Row/column output tiles and padded extents (hp mult of TH, wp mult of TW;
    # wp >= 128 so output stores stay unmasked lane-dense vst).
    TH, hp = _pick_tile(h, 128, 16)
    TW, wp = _pick_tile(w, 256, 128)
    r_pad = _round_up(r, 8)        # sublane-aligned row margin
    c_pad = _round_up(r, 128)      # lane-aligned column margin
    KH = TH + 2 * r_pad
    KW = TW + 2 * c_pad
    hin = hp + 2 * r_pad
    win = wp + 2 * c_pad

    def pad_img(x):
        buf = jnp.zeros((nc, hin, win), jnp.float32)
        return buf.at[:, r_pad:r_pad + h, c_pad:c_pad + w].set(x.reshape(nc, h, w))

    i_pad = pad_img(I)
    p_pad = pad_img(p)

    # VMEM budget: double-buffered I/p/out blocks + scratch + live matmul values,
    # clamped to the chip's physical VMEM (v7x = 64 MiB) minus headroom.
    mm_bytes = jnp.dtype(matmul_dtype).itemsize
    est = (2 * 2 * hin * win * 4          # I and p blocks, double-buffered
           + 2 * hp * wp * 4              # output block, double-buffered
           + hin * win * 4                # a/b zero-margin staging scratch
           + 3 * hp * wp * 4              # mean_I / mean_p / cov-a scratch
           + (KH + TH) * win * 4          # row-pass slab + row-sum values
           + (TH * KW + 3 * TH * TW) * 4  # col-pass live values
           + (TH * KH + KW * TW) * (4 + mm_bytes))   # band slabs
    cap = _vmem_capacity_bytes()
    vmem_limit = int(min(max(2 * est, 32 * 2 ** 20), cap - 4 * 2 ** 20))

    kernel = _make_kernel(h, w, r, eps, hp, wp, TH, TW, r_pad, c_pad, matmul_dtype)

    out_pad = pl.pallas_call(
        kernel,
        out_shape=jax.ShapeDtypeStruct((nc, hp, wp), jnp.float32),
        grid=(nc,),
        in_specs=[
            pl.BlockSpec((1, hin, win), lambda i: (i, 0, 0)),   # I (padded)
            pl.BlockSpec((1, hin, win), lambda i: (i, 0, 0)),   # p (padded)
        ],
        out_specs=pl.BlockSpec((1, hp, wp), lambda i: (i, 0, 0)),
        scratch_shapes=[
            pltpu.VMEM((hin, win), jnp.float32),   # zero-margin a/b staging
            pltpu.VMEM((hp, wp), jnp.float32),     # mean_I  -> mean_a
            pltpu.VMEM((hp, wp), jnp.float32),     # mean_p
            pltpu.VMEM((hp, wp), jnp.float32),     # cov_Ip  -> a -> b
        ],
        compiler_params=pltpu.CompilerParams(
            dimension_semantics=("parallel",),     # one image per step
            vmem_limit_bytes=vmem_limit),
    )(i_pad, p_pad)

    return out_pad[:, :h, :w].reshape(n, c, h, w)


def _guided_filter_ref(I, p, r=40, eps=1e-3):
    """Exact pure-JAX f32 reference (mirrors PyTorch AvgPool + /N semantics)."""
    n, c, h, w = I.shape
    ih = jnp.arange(h)
    iw = jnp.arange(w)
    bh = (jnp.abs(ih[:, None] - ih[None, :]) <= r).astype(jnp.float32)
    bw = (jnp.abs(iw[:, None] - iw[None, :]) <= r).astype(jnp.float32)
    nh = (jnp.minimum(ih + r, h - 1) - jnp.maximum(ih - r, 0) + 1).astype(jnp.float32)
    nw = (jnp.minimum(iw + r, w - 1) - jnp.maximum(iw - r, 0) + 1).astype(jnp.float32)
    inv_n = 1.0 / (nh[:, None] * nw[None, :])

    def box_mean(x):
        s = jnp.einsum("hk,nckw->nchw", bh, x)
        s = jnp.einsum("nchw,wj->nchj", s, bw)
        return s * inv_n

    mean_I = box_mean(I)
    mean_p = box_mean(p)
    mean_Ip = box_mean(I * p)
    cov_Ip = mean_Ip - mean_I * mean_p
    mean_II = box_mean(I * I)
    var_I = mean_II - mean_I * mean_I
    a = cov_Ip / (var_I + eps)
    b = mean_p - a * mean_I
    return box_mean(a) * I + box_mean(b)


if __name__ == "__main__":
    key = jax.random.PRNGKey(0)
    k1, k2 = jax.random.split(key)
    B, C, H, W = 2, 4, 16, 16
    I = jax.random.uniform(k1, (B, C, H, W), dtype=jnp.float32)
    p = jax.random.uniform(k2, (B, C, H, W), dtype=jnp.float32)

    # 1) Default path (f32 first pass, bf16 a/b smoothing pass) against the
    #    EXACT f32 reference (module default r=40: window covers the image).
    out = jax.block_until_ready(guided_filter(I, p, r=40, eps=1e-3))
    ref = _guided_filter_ref(I, p, r=40, eps=1e-3)
    assert out.shape == (B, C, H, W)
    assert jnp.allclose(out, ref, atol=2e-2, rtol=2e-2), \
        float(jnp.max(jnp.abs(out - ref)))

    # 2) All-f32 matmul path, tight tolerance against the exact reference
    #    (remaining delta: approximate EUP reciprocal + accumulation order).
    out_f32 = jax.block_until_ready(
        guided_filter(I, p, r=40, eps=1e-3, matmul_dtype=jnp.float32))
    assert jnp.allclose(out_f32, ref, atol=5e-3, rtol=5e-3), \
        float(jnp.max(jnp.abs(out_f32 - ref)))

    # 3) Clamped-window path (2r+1 < H, W) exercising the banded blocks.
    out_r3 = jax.block_until_ready(guided_filter(I, p, r=3, eps=1e-3))
    ref_r3 = _guided_filter_ref(I, p, r=3, eps=1e-3)
    assert jnp.allclose(out_r3, ref_r3, atol=2e-2, rtol=2e-2), \
        float(jnp.max(jnp.abs(out_r3 - ref_r3)))

    print("KERNEL_OK")
</pallas_src>

<mosaic_0001>
module attributes {stable_mosaic.version = 11 : i64} {
  func.func @kernel(%arg0: i32, %arg1: memref<1x96x384xf32, #tpu.memory_space<vmem>>, %arg2: memref<1x96x384xf32, #tpu.memory_space<vmem>>, %arg3: memref<1x16x128xf32, #tpu.memory_space<vmem>>, %arg4: memref<96x384xf32, #tpu.memory_space<vmem>>, %arg5: memref<16x128xf32, #tpu.memory_space<vmem>>, %arg6: memref<16x128xf32, #tpu.memory_space<vmem>>, %arg7: memref<16x128xf32, #tpu.memory_space<vmem>>) attributes {dimension_semantics = [#tpu.dimension_semantics<parallel>], iteration_bounds = array<i64: 8>, scalar_prefetch = 0 : i64, scratch_operands = 4 : i64, tpu.core_type = #tpu.core_type<tc>, window_params = [{transform_indices = @transform_0, window_bounds = array<i64: 1, 96, 384>}, {transform_indices = @transform_1, window_bounds = array<i64: 1, 96, 384>}, {transform_indices = @transform_2, window_bounds = array<i64: 1, 16, 128>}]} {
    %cst = arith.constant 0.000000e+00 : f32
    %0 = vector.broadcast %cst : f32 to vector<96x384xf32>
    %c0 = arith.constant 0 : index
    %c0_0 = arith.constant 0 : index
    %1 = vector.load %arg4[%c0, %c0_0] : memref<96x384xf32, #tpu.memory_space<vmem>>, vector<96x384xf32>
    tpu.vector_store %arg4[%c0, %c0_0], %0 {strides = array<i32>} : memref<96x384xf32, #tpu.memory_space<vmem>>, vector<96x384xf32>,
    %2 = tpu.iota {dimensions = array<i32: 0>} : vector<16x1xi32>
    %c40_i32 = arith.constant 40 : i32
    %3 = vector.broadcast %c40_i32 : i32 to vector<16x1xi32>
    %4 = arith.addi %2, %3 : vector<16x1xi32>
    %c15_i32 = arith.constant 15 : i32
    %5 = vector.broadcast %c15_i32 : i32 to vector<16x1xi32>
    %6 = arith.minsi %4, %5 : vector<16x1xi32>
    %c40_i32_1 = arith.constant 40 : i32
    %7 = vector.broadcast %c40_i32_1 : i32 to vector<16x1xi32>
    %8 = arith.subi %2, %7 : vector<16x1xi32>
    %c0_i32 = arith.constant 0 : i32
    %9 = vector.broadcast %c0_i32 : i32 to vector<16x1xi32>
    %10 = arith.maxsi %8, %9 : vector<16x1xi32>
    %11 = arith.subi %6, %10 : vector<16x1xi32>
    %c1_i32 = arith.constant 1 : i32
    %12 = vector.broadcast %c1_i32 : i32 to vector<16x1xi32>
    %13 = arith.addi %11, %12 : vector<16x1xi32>
    %c16_i32 = arith.constant 16 : i32
    %14 = vector.broadcast %c16_i32 : i32 to vector<16x1xi32>
    %15 = arith.cmpi slt, %2, %14 : vector<16x1xi32>
    %c1_i32_2 = arith.constant 1 : i32
    %16 = vector.broadcast %c1_i32_2 : i32 to vector<16x1xi32>
    %17 = arith.maxsi %13, %16 : vector<16x1xi32>
    %18 = arith.sitofp %17 : vector<16x1xi32> to vector<16x1xf32>
    %cst_3 = arith.constant 1.000000e+00 : f32
    %19 = vector.broadcast %cst_3 : f32 to vector<16x1xf32>
    %20 = arith.divf %19, %18 : vector<16x1xf32>
    %cst_4 = arith.constant 0.000000e+00 : f32
    %21 = vector.broadcast %cst_4 : f32 to vector<16x1xf32>
    %22 = arith.select %15, %20, %21 : vector<16x1xi1>, vector<16x1xf32>
    %23 = tpu.iota {dimensions = array<i32: 1>} : vector<1x128xi32>
    %c40_i32_5 = arith.constant 40 : i32
    %24 = vector.broadcast %c40_i32_5 : i32 to vector<1x128xi32>
    %25 = arith.addi %23, %24 : vector<1x128xi32>
    %c15_i32_6 = arith.constant 15 : i32
    %26 = vector.broadcast %c15_i32_6 : i32 to vector<1x128xi32>
    %27 = arith.minsi %25, %26 : vector<1x128xi32>
    %c40_i32_7 = arith.constant 40 : i32
    %28 = vector.broadcast %c40_i32_7 : i32 to vector<1x128xi32>
    %29 = arith.subi %23, %28 : vector<1x128xi32>
    %c0_i32_8 = arith.constant 0 : i32
    %30 = vector.broadcast %c0_i32_8 : i32 to vector<1x128xi32>
    %31 = arith.maxsi %29, %30 : vector<1x128xi32>
    %32 = arith.subi %27, %31 : vector<1x128xi32>
    %c1_i32_9 = arith.constant 1 : i32
    %33 = vector.broadcast %c1_i32_9 : i32 to vector<1x128xi32>
    %34 = arith.addi %32, %33 : vector<1x128xi32>
    %c16_i32_10 = arith.constant 16 : i32
    %35 = vector.broadcast %c16_i32_10 : i32 to vector<1x128xi32>
    %36 = arith.cmpi slt, %23, %35 : vector<1x128xi32>
    %c1_i32_11 = arith.constant 1 : i32
    %37 = vector.broadcast %c1_i32_11 : i32 to vector<1x128xi32>
    %38 = arith.maxsi %34, %37 : vector<1x128xi32>
    %39 = arith.sitofp %38 : vector<1x128xi32> to vector<1x128xf32>
    %cst_12 = arith.constant 1.000000e+00 : f32
    %40 = vector.broadcast %cst_12 : f32 to vector<1x128xf32>
    %41 = arith.divf %40, %39 : vector<1x128xf32>
    %cst_13 = arith.constant 0.000000e+00 : f32
    %42 = vector.broadcast %cst_13 : f32 to vector<1x128xf32>
    %43 = arith.select %36, %41, %42 : vector<1x128xi1>, vector<1x128xf32>
    %44 = tpu.iota {dimensions = array<i32: 0>} : vector<16x96xi32>
    %45 = tpu.iota {dimensions = array<i32: 1>} : vector<16x96xi32>
    %c40_i32_14 = arith.constant 40 : i32
    %46 = vector.broadcast %c40_i32_14 : i32 to vector<16x96xi32>
    %47 = arith.subi %45, %46 : vector<16x96xi32>
    %48 = arith.subi %44, %47 : vector<16x96xi32>
    %49 = math.absi %48 : vector<16x96xi32>
    %c40_i32_15 = arith.constant 40 : i32
    %50 = vector.broadcast %c40_i32_15 : i32 to vector<16x96xi32>
    %51 = arith.cmpi sle, %49, %50 : vector<16x96xi32>
    %52 = arith.extui %51 : vector<16x96xi1> to vector<16x96xi32>
    %53 = arith.sitofp %52 : vector<16x96xi32> to vector<16x96xf32>
    %54 = tpu.iota {dimensions = array<i32: 0>} : vector<384x128xi32>
    %55 = tpu.iota {dimensions = array<i32: 1>} : vector<384x128xi32>
    %c128_i32 = arith.constant 128 : i32
    %56 = vector.broadcast %c128_i32 : i32 to vector<384x128xi32>
    %57 = arith.subi %54, %56 : vector<384x128xi32>
    %58 = arith.subi %57, %55 : vector<384x128xi32>
    %59 = math.absi %58 : vector<384x128xi32>
    %c40_i32_16 = arith.constant 40 : i32
    %60 = vector.broadcast %c40_i32_16 : i32 to vector<384x128xi32>
    %61 = arith.cmpi sle, %59, %60 : vector<384x128xi32>
    %62 = arith.extui %61 : vector<384x128xi1> to vector<384x128xi32>
    %63 = arith.sitofp %62 : vector<384x128xi32> to vector<384x128xf32>
    %64 = arith.truncf %53 : vector<16x96xf32> to vector<16x96xbf16>
    %65 = arith.truncf %63 : vector<384x128xf32> to vector<384x128xbf16>
    %c0_17 = arith.constant 0 : index
    %c0_18 = arith.constant 0 : index
    %c0_19 = arith.constant 0 : index
    %66 = vector.load %arg1[%c0_17, %c0_18, %c0_19] : memref<1x96x384xf32, #tpu.memory_space<vmem>>, vector<1x96x384xf32>
    %67 = vector.shape_cast %66 : vector<1x96x384xf32> to vector<96x384xf32>
    %cst_20 = arith.constant dense<0.000000e+00> : vector<16x384xf32>
    %68 = tpu.matmul %53, %67, %cst_20 {dimension_numbers = #tpu.dot_dimension_numbers<[1], [0], [0], [1], [0, 0, 1, 1], [], []>} : vector<16x96xf32>, vector<96x384xf32>, vector<16x384xf32> -> vector<16x384xf32>
    %cst_21 = arith.constant dense<0.000000e+00> : vector<16x128xf32>
    %69 = tpu.matmul %68, %63, %cst_21 {dimension_numbers = #tpu.dot_dimension_numbers<[1], [0], [0], [1], [0, 0, 1, 1], [], []>} : vector<16x384xf32>, vector<384x128xf32>, vector<16x128xf32> -> vector<16x128xf32>
    %70 = vector.broadcast %22 : vector<16x1xf32> to vector<16x128xf32>
    %71 = arith.mulf %69, %70 : vector<16x128xf32>
    %72 = vector.broadcast %43 : vector<1x128xf32> to vector<16x128xf32>
    %73 = arith.mulf %71, %72 : vector<16x128xf32>
    %c0_22 = arith.constant 0 : index
    %c0_23 = arith.constant 0 : index
    %74 = vector.load %arg5[%c0_22, %c0_23] : memref<16x128xf32, #tpu.memory_space<vmem>>, vector<16x128xf32>
    tpu.vector_store %arg5[%c0_22, %c0_23], %73 {strides = array<i32>} : memref<16x128xf32, #tpu.memory_space<vmem>>, vector<16x128xf32>,
    %c0_24 = arith.constant 0 : index
    %c0_25 = arith.constant 0 : index
    %c0_26 = arith.constant 0 : index
    %75 = vector.load %arg2[%c0_24, %c0_25, %c0_26] : memref<1x96x384xf32, #tpu.memory_space<vmem>>, vector<1x96x384xf32>
    %76 = vector.shape_cast %75 : vector<1x96x384xf32> to vector<96x384xf32>
    %cst_27 = arith.constant dense<0.000000e+00> : vector<16x384xf32>
    %77 = tpu.matmul %53, %76, %cst_27 {dimension_numbers = #tpu.dot_dimension_numbers<[1], [0], [0], [1], [0, 0, 1, 1], [], []>} : vector<16x96xf32>, vector<96x384xf32>, vector<16x384xf32> -> vector<16x384xf32>
    %cst_28 = arith.constant dense<0.000000e+00> : vector<16x128xf32>
    %78 = tpu.matmul %77, %63, %cst_28 {dimension_numbers = #tpu.dot_dimension_numbers<[1], [0], [0], [1], [0, 0, 1, 1], [], []>} : vector<16x384xf32>, vector<384x128xf32>, vector<16x128xf32> -> vector<16x128xf32>
    %79 = vector.broadcast %22 : vector<16x1xf32> to vector<16x128xf32>
    %80 = arith.mulf %78, %79 : vector<16x128xf32>
    %81 = vector.broadcast %43 : vector<1x128xf32> to vector<16x128xf32>
    %82 = arith.mulf %80, %81 : vector<16x128xf32>
    %c0_29 = arith.constant 0 : index
    %c0_30 = arith.constant 0 : index
    %83 = vector.load %arg6[%c0_29, %c0_30] : memref<16x128xf32, #tpu.memory_space<vmem>>, vector<16x128xf32>
    tpu.vector_store %arg6[%c0_29, %c0_30], %82 {strides = array<i32>} : memref<16x128xf32, #tpu.memory_space<vmem>>, vector<16x128xf32>,
    %c0_31 = arith.constant 0 : index
    %c0_32 = arith.constant 0 : index
    %c0_33 = arith.constant 0 : index
    %84 = vector.load %arg1[%c0_31, %c0_32, %c0_33] : memref<1x96x384xf32, #tpu.memory_space<vmem>>, vector<1x96x384xf32>
    %85 = vector.shape_cast %84 : vector<1x96x384xf32> to vector<96x384xf32>
    %c0_34 = arith.constant 0 : index
    %c0_35 = arith.constant 0 : index
    %c0_36 = arith.constant 0 : index
    %86 = vector.load %arg2[%c0_34, %c0_35, %c0_36] : memref<1x96x384xf32, #tpu.memory_space<vmem>>, vector<1x96x384xf32>
    %87 = vector.shape_cast %86 : vector<1x96x384xf32> to vector<96x384xf32>
    %88 = arith.mulf %85, %87 : vector<96x384xf32>
    %cst_37 = arith.constant dense<0.000000e+00> : vector<16x384xf32>
    %89 = tpu.matmul %53, %88, %cst_37 {dimension_numbers = #tpu.dot_dimension_numbers<[1], [0], [0], [1], [0, 0, 1, 1], [], []>} : vector<16x96xf32>, vector<96x384xf32>, vector<16x384xf32> -> vector<16x384xf32>
    %cst_38 = arith.constant dense<0.000000e+00> : vector<16x128xf32>
    %90 = tpu.matmul %89, %63, %cst_38 {dimension_numbers = #tpu.dot_dimension_numbers<[1], [0], [0], [1], [0, 0, 1, 1], [], []>} : vector<16x384xf32>, vector<384x128xf32>, vector<16x128xf32> -> vector<16x128xf32>
    %91 = vector.broadcast %22 : vector<16x1xf32> to vector<16x128xf32>
    %92 = arith.mulf %90, %91 : vector<16x128xf32>
    %93 = vector.broadcast %43 : vector<1x128xf32> to vector<16x128xf32>
    %94 = arith.mulf %92, %93 : vector<16x128xf32>
    %c0_39 = arith.constant 0 : index
    %c0_40 = arith.constant 0 : index
    %95 = vector.load %arg5[%c0_39, %c0_40] : memref<16x128xf32, #tpu.memory_space<vmem>>, vector<16x128xf32>
    %c0_41 = arith.constant 0 : index
    %c0_42 = arith.constant 0 : index
    %96 = vector.load %arg6[%c0_41, %c0_42] : memref<16x128xf32, #tpu.memory_space<vmem>>, vector<16x128xf32>
    %97 = arith.mulf %95, %96 : vector<16x128xf32>
    %98 = arith.subf %94, %97 : vector<16x128xf32>
    %c0_43 = arith.constant 0 : index
    %c0_44 = arith.constant 0 : index
    %99 = vector.load %arg7[%c0_43, %c0_44] : memref<16x128xf32, #tpu.memory_space<vmem>>, vector<16x128xf32>
    tpu.vector_store %arg7[%c0_43, %c0_44], %98 {strides = array<i32>} : memref<16x128xf32, #tpu.memory_space<vmem>>, vector<16x128xf32>,
    %c0_45 = arith.constant 0 : index
    %c0_46 = arith.constant 0 : index
    %c0_47 = arith.constant 0 : index
    %100 = vector.load %arg1[%c0_45, %c0_46, %c0_47] : memref<1x96x384xf32, #tpu.memory_space<vmem>>, vector<1x96x384xf32>
    %101 = vector.shape_cast %100 : vector<1x96x384xf32> to vector<96x384xf32>
    %102 = arith.mulf %101, %101 : vector<96x384xf32>
    %cst_48 = arith.constant dense<0.000000e+00> : vector<16x384xf32>
    %103 = tpu.matmul %53, %102, %cst_48 {dimension_numbers = #tpu.dot_dimension_numbers<[1], [0], [0], [1], [0, 0, 1, 1], [], []>} : vector<16x96xf32>, vector<96x384xf32>, vector<16x384xf32> -> vector<16x384xf32>
    %cst_49 = arith.constant dense<0.000000e+00> : vector<16x128xf32>
    %104 = tpu.matmul %103, %63, %cst_49 {dimension_numbers = #tpu.dot_dimension_numbers<[1], [0], [0], [1], [0, 0, 1, 1], [], []>} : vector<16x384xf32>, vector<384x128xf32>, vector<16x128xf32> -> vector<16x128xf32>
    %105 = vector.broadcast %22 : vector<16x1xf32> to vector<16x128xf32>
    %106 = arith.mulf %104, %105 : vector<16x128xf32>
    %107 = vector.broadcast %43 : vector<1x128xf32> to vector<16x128xf32>
    %108 = arith.mulf %106, %107 : vector<16x128xf32>
    %c0_50 = arith.constant 0 : index
    %c0_51 = arith.constant 0 : index
    %109 = vector.load %arg5[%c0_50, %c0_51] : memref<16x128xf32, #tpu.memory_space<vmem>>, vector<16x128xf32>
    %c0_52 = arith.constant 0 : index
    %c0_53 = arith.constant 0 : index
    %110 = vector.load %arg6[%c0_52, %c0_53] : memref<16x128xf32, #tpu.memory_space<vmem>>, vector<16x128xf32>
    %c0_54 = arith.constant 0 : index
    %c0_55 = arith.constant 0 : index
    %111 = vector.load %arg7[%c0_54, %c0_55] : memref<16x128xf32, #tpu.memory_space<vmem>>, vector<16x128xf32>
    %112 = arith.mulf %109, %109 : vector<16x128xf32>
    %113 = arith.subf %108, %112 : vector<16x128xf32>
    %cst_56 = arith.constant 1.000000e-03 : f32
    %114 = vector.broadcast %cst_56 : f32 to vector<16x128xf32>
    %115 = arith.addf %113, %114 : vector<16x128xf32>
    %116 = tpu.reciprocal %115 {approx = true} : vector<16x128xf32> -> vector<16x128xf32>
    %117 = arith.mulf %111, %116 : vector<16x128xf32>
    %c40 = arith.constant 40 : index
    %c128 = arith.constant 128 : index
    %118 = vector.load %arg4[%c40, %c128] : memref<96x384xf32, #tpu.memory_space<vmem>>, vector<16x128xf32>
    tpu.vector_store %arg4[%c40, %c128], %117 {strides = array<i32>} : memref<96x384xf32, #tpu.memory_space<vmem>>, vector<16x128xf32>,
    %119 = arith.mulf %117, %109 : vector<16x128xf32>
    %120 = arith.subf %110, %119 : vector<16x128xf32>
    %c0_57 = arith.constant 0 : index
    %c0_58 = arith.constant 0 : index
    %121 = vector.load %arg7[%c0_57, %c0_58] : memref<16x128xf32, #tpu.memory_space<vmem>>, vector<16x128xf32>
    tpu.vector_store %arg7[%c0_57, %c0_58], %120 {strides = array<i32>} : memref<16x128xf32, #tpu.memory_space<vmem>>, vector<16x128xf32>,
    %c0_59 = arith.constant 0 : index
    %c0_60 = arith.constant 0 : index
    %122 = vector.load %arg4[%c0_59, %c0_60] : memref<96x384xf32, #tpu.memory_space<vmem>>, vector<96x384xf32>
    %123 = arith.truncf %122 : vector<96x384xf32> to vector<96x384xbf16>
    %cst_61 = arith.constant dense<0.000000e+00> : vector<16x384xf32>
    %124 = tpu.matmul %64, %123, %cst_61 {dimension_numbers = #tpu.dot_dimension_numbers<[1], [0], [0], [1], [0, 0, 1, 1], [], []>} : vector<16x96xbf16>, vector<96x384xbf16>, vector<16x384xf32> -> vector<16x384xf32>
    %125 = arith.truncf %124 : vector<16x384xf32> to vector<16x384xbf16>
    %cst_62 = arith.constant dense<0.000000e+00> : vector<16x128xf32>
    %126 = tpu.matmul %125, %65, %cst_62 {dimension_numbers = #tpu.dot_dimension_numbers<[1], [0], [0], [1], [0, 0, 1, 1], [], []>} : vector<16x384xbf16>, vector<384x128xbf16>, vector<16x128xf32> -> vector<16x128xf32>
    %127 = vector.broadcast %22 : vector<16x1xf32> to vector<16x128xf32>
    %128 = arith.mulf %126, %127 : vector<16x128xf32>
    %129 = vector.broadcast %43 : vector<1x128xf32> to vector<16x128xf32>
    %130 = arith.mulf %128, %129 : vector<16x128xf32>
    %c0_63 = arith.constant 0 : index
    %c0_64 = arith.constant 0 : index
    %131 = vector.load %arg5[%c0_63, %c0_64] : memref<16x128xf32, #tpu.memory_space<vmem>>, vector<16x128xf32>
    tpu.vector_store %arg5[%c0_63, %c0_64], %130 {strides = array<i32>} : memref<16x128xf32, #tpu.memory_space<vmem>>, vector<16x128xf32>,
    %c0_65 = arith.constant 0 : index
    %c0_66 = arith.constant 0 : index
    %132 = vector.load %arg7[%c0_65, %c0_66] : memref<16x128xf32, #tpu.memory_space<vmem>>, vector<16x128xf32>
    %c40_67 = arith.constant 40 : index
    %c128_68 = arith.constant 128 : index
    %133 = vector.load %arg4[%c40_67, %c128_68] : memref<96x384xf32, #tpu.memory_space<vmem>>, vector<16x128xf32>
    tpu.vector_store %arg4[%c40_67, %c128_68], %132 {strides = array<i32>} : memref<96x384xf32, #tpu.memory_space<vmem>>, vector<16x128xf32>,
    %c0_69 = arith.constant 0 : index
    %c0_70 = arith.constant 0 : index
    %134 = vector.load %arg4[%c0_69, %c0_70] : memref<96x384xf32, #tpu.memory_space<vmem>>, vector<96x384xf32>
    %135 = arith.truncf %134 : vector<96x384xf32> to vector<96x384xbf16>
    %cst_71 = arith.constant dense<0.000000e+00> : vector<16x384xf32>
    %136 = tpu.matmul %64, %135, %cst_71 {dimension_numbers = #tpu.dot_dimension_numbers<[1], [0], [0], [1], [0, 0, 1, 1], [], []>} : vector<16x96xbf16>, vector<96x384xbf16>, vector<16x384xf32> -> vector<16x384xf32>
    %137 = arith.truncf %136 : vector<16x384xf32> to vector<16x384xbf16>
    %cst_72 = arith.constant dense<0.000000e+00> : vector<16x128xf32>
    %138 = tpu.matmul %137, %65, %cst_72 {dimension_numbers = #tpu.dot_dimension_numbers<[1], [0], [0], [1], [0, 0, 1, 1], [], []>} : vector<16x384xbf16>, vector<384x128xbf16>, vector<16x128xf32> -> vector<16x128xf32>
    %139 = vector.broadcast %22 : vector<16x1xf32> to vector<16x128xf32>
    %140 = arith.mulf %138, %139 : vector<16x128xf32>
    %141 = vector.broadcast %43 : vector<1x128xf32> to vector<16x128xf32>
    %142 = arith.mulf %140, %141 : vector<16x128xf32>
    %c0_73 = arith.constant 0 : index
    %c40_74 = arith.constant 40 : index
    %c128_75 = arith.constant 128 : index
    %143 = vector.load %arg1[%c0_73, %c40_74, %c128_75] : memref<1x96x384xf32, #tpu.memory_space<vmem>>, vector<1x16x128xf32>
    %144 = vector.shape_cast %143 : vector<1x16x128xf32> to vector<16x128xf32>
    %c0_76 = arith.constant 0 : index
    %c0_77 = arith.constant 0 : index
    %145 = vector.load %arg5[%c0_76, %c0_77] : memref<16x128xf32, #tpu.memory_space<vmem>>, vector<16x128xf32>
    %146 = arith.mulf %145, %144 : vector<16x128xf32>
    %147 = arith.addf %146, %142 : vector<16x128xf32>
    %c0_78 = arith.constant 0 : index
    %c0_79 = arith.constant 0 : index
    %c0_80 = arith.constant 0 : index
    %148 = vector.load %arg3[%c0_78, %c0_79, %c0_80] : memref<1x16x128xf32, #tpu.memory_space<vmem>>, vector<1x16x128xf32>
    %149 = vector.shape_cast %148 : vector<1x16x128xf32> to vector<16x128xf32>
    %150 = vector.shape_cast %147 : vector<16x128xf32> to vector<1x16x128xf32>
    tpu.vector_store %arg3[%c0_78, %c0_79, %c0_80], %150 {strides = array<i32>} : memref<1x16x128xf32, #tpu.memory_space<vmem>>, vector<1x16x128xf32>,
    return
  }
  func.func @transform_0(%arg0: i32) -> (i32, i32, i32) {
    %c0_i32 = arith.constant 0 : i32
    %c0_i32_0 = arith.constant 0 : i32
    %c0_i32_1 = arith.constant 0 : i32
    return %arg0, %c0_i32, %c0_i32_0 : i32, i32, i32
  }
  func.func @transform_1(%arg0: i32) -> (i32, i32, i32) {
    %c0_i32 = arith.constant 0 : i32
    %c0_i32_0 = arith.constant 0 : i32
    %c0_i32_1 = arith.constant 0 : i32
    return %arg0, %c0_i32, %c0_i32_0 : i32, i32, i32
  }
  func.func @transform_2(%arg0: i32) -> (i32, i32, i32) {
    %c0_i32 = arith.constant 0 : i32
    %c0_i32_0 = arith.constant 0 : i32
    %c0_i32_1 = arith.constant 0 : i32
    return %arg0, %c0_i32, %c0_i32_0 : i32, i32, i32
  }
}

</mosaic_0001>

<bundles_post_ra>
// kernel: tpu_custom_call.1
= control target key start
LH: loop header
LB: loop body
LE: loop exit
PB: predicated region body
PF: predicated region fallthrough
CT: control target
= control target key end

     0   :  { %7 = vsyncpa [#allocation7], 0  ;;  %s5716_s0 = inlined_call_operand.hbm [shape: f32[8,96,384], index: 0, kind: input, shape index: {}]   ;;  %s5717_s1 = inlined_call_operand.hbm [shape: f32[8,96,384], index: 1, kind: input, shape index: {}]   ;;  %s5718_s2 = inlined_call_operand.hbm [shape: f32[8,16,128], index: 2, kind: output, shape index: {}]  }
   0x1   :  { %9 = vsyncpa [#allocation7 + $0x1], 0 }
   0x2   :  { %10 = vsyncpa [#allocation10], 0 }
   0x3   :  { %12 = vsyncpa [#allocation10 + $0x1], 0 }
   0x4   :  { %13 = vsyncpa [#allocation8], 0 }
   0x5   :  { %15 = vsyncpa [#allocation8 + $0x1], 0  ;;  %s4296_s9 = smov 0   ;;  %s4298_s10 = smov 0  }
   0x6   :  { %s4300_s11 = smov 0   ;;  %s4302_s12 = smov 0  }
   0x7 LB: > { %s4317_s13 = sadd.s32 4294967295, %s4265_s12   ;;  %s2859_s14 = sadd.s32 4294967294, %s4265_s12   ;;  %s4265_s12 = sphi %s4302_s12, %s5997_s12   ;;  %s4261_s11 = sphi %s4300_s11, %s5996_s11   ;;  %s4257_s10 = sphi %s4298_s10, %s5995_s10   ;;  %s4253_s9 = sphi %s4296_s9, %s5994_s9  }
   0x8   : > { %s4321_s15 = sadd.s32 1, %s4265_s12   ;;  %s28_s16 = sadd.s32 1, %s4261_s11 }
   0x9   : > { %s25_s17 = ssub.s32 %s4265_s12, %s4321_s15  ;;  %p35_p0 = scmp.ne.s32.totalorder %s4261_s11, %s4257_s10 }
   0xa   : > { %p26_p1 = scmp.eq.s32.totalorder %s25_s17, 0  ;;  %p36_p2 = scmp.eq.s32.totalorder %s4265_s12, 0 }
   0xb   : > { %p41_p3 = scmp.ne.s32.totalorder %s4257_s10, %s4253_s9  ;;  %p42_p4 = scmp.eq.s32.totalorder %s4317_s13, 0 }
   0xc   : > { %s4333_s18 = scalar_select %p26_p1, %s4261_s11, %s28_s16  }
   0xd   : > { %p37_p5 = por %p36_p2, %p35_p0  ;;  %p4335_p6 = por %p42_p4, %p41_p3 }
   0xe   : > { %p91_p7 = scmp.eq.s32.totalorder %s4317_s13, 7  ;;  %p97_p8 = scmp.eq.s32.totalorder %s2859_s14, 7 }
   0xf   : > { %s5820_s19 = scalar_select %p4335_p6, 1, 0 }
  0x10   : > { %p4084_p9 = scmp.lt.s32.totalorder %s4265_s12, 8  ;;  %p4341_p10 = por %p91_p7, %p35_p0 }
  0x11   : > { %p4345_p11 = por %p97_p8, %p41_p3  ;;  %s4350_s22 = sand.u32 1, %s4261_s11  }
  0x12   : > { %s5821_s20 = scalar_select %p4341_p10, 1, 0 }
  0x13   : > { %s5822_s21 = scalar_select %p4345_p11, 1, 0 }
  0x14   : > { %s4063_s23 = smul.u32 4608, %s4265_s12  ;;  %p4361_p12 = pnand %p4084_p9, %p37_p5 }
  0x15   : > { %s4062_s24 = smul.u32 288, %s4350_s22  ;;  %s118_s3 = scalar_lea.sflag [#allocation7], %s4350_s22 }
  0x16   : > { %s4359_s27 = scalar_lea.hbm %s5716_s0, %s4063_s23  ;;  %p4137_p0 = pneg %p4361_p12 }
  0x17   : > { %s121_s29 = scalar_lea.vmem [#allocation6], %s4062_s24  ;;  %s4135_s4 = scalar_lea.hbm %s4359_s27, 4608 }
  0x18   : > { %s128_s30 = sshll.u32 %s121_s29, 4  ;;  %p4136_p13 = scmp.ne.s32.totalorder %s4359_s27, %s4135_s4  ;;  %s4367_s30 = int_to_ptr.vmem [resolvable:$true] %s128_s30 }
  0x19   : > { %s4140_s7 = scalar_lea.hbm %s5716_s0, 36864  ;;  %p4141_p3 = scmp.lt.u32.totalorder %s4359_s27, %s5716_s0 }
  0x1a   : > { %p4138_p1 = pnand %p4137_p0, %p4136_p13  ;;  %p4142_p4 = scmp.lt.u32.totalorder %s4140_s7, %s4135_s4 }
  0x1b   : > { %p4144_p7 = scmp.lt.u32.totalorder %s4135_s4, %s4359_s27 }
  0x1c   : > { %p4139_p2 = pneg %p4138_p1  ;;  %p4143_p5 = por %p4142_p4, %p4141_p3 }
  0x1e   : > { %p4145_p8 = por %p4144_p7, %p4143_p5 }
  0x20   : > { %p4146_p9 = pnand %p4145_p8, %p4139_p2 }
  0x22   : > { %4149 = shalt.err (!%p4146_p9)
}
  0x23   : > { %s4150_s16 = scalar_lea.vmem %s4367_s30, 4608  ;;  %s4267_s17 = smov [#allocation6]  }
  0x24   : > { %p4151_p13 = scmp.ne.s32.totalorder %s4367_s30, %s4150_s16  ;;  %s4155_s25 = sshll.u32 %s4267_s17, 4  ;;  %s4156_s25 = int_to_ptr.vmem [resolvable:$false] %s4155_s25 }
  0x25   : > { %s4157_s26 = scalar_lea.vmem %s4156_s25, 9216  ;;  %p4158_p10 = scmp.lt.s32.totalorder %s4367_s30, %s4156_s25 }
  0x26   : > { %p4153_p1 = pnand %p4151_p13, %p4137_p0  ;;  %p4159_p3 = scmp.lt.s32.totalorder %s4157_s26, %s4150_s16 }
  0x28   : > { %p4154_p11 = pneg %p4153_p1  ;;  %p4160_p4 = por %p4159_p3, %p4158_p10 }
  0x2a   : > { %p4161_p5 = pnand %p4160_p4, %p4154_p11 }
  0x2c   : > { %4164 = shalt.err (!%p4161_p5)
}
  0x2d   : > { %s4268_s29 = smov 384   ;;  %s4269_s4 = smov 24  }
  0x2e   : > { %4076 = dma.hbm_to_vmem [thread:$0]  (!%p4361_p12), %s4359_s27, 4608, %s4367_s30, %s118_s3, %s4268_s29, %s4268_s29, %s4269_s4  }
  0x2f   : > { %p2864_p10 = scmp.ge.s32.totalorder %s4265_s12, 1  ;;  %p157_p11 = scmp.lt.s32.totalorder %s4265_s12, 9 }
  0x30   : > { %s4411_s8 = scalar_lea.hbm %s5717_s1, %s4063_s23  ;;  %s142_s14 = scalar_lea.vmem [#allocation9], %s4062_s24 }
  0x31   : > { %p4402_p2 = pnand %p2864_p10, %p157_p11  ;;  %s149_s16 = sshll.u32 %s142_s14, 4  ;;  %s4415_s16 = int_to_ptr.vmem [resolvable:$true] %s149_s16 }
  0x32   : > { %s139_s27 = scalar_lea.sflag [#allocation10], %s4350_s22  ;;  %s4165_s30 = scalar_lea.hbm %s4411_s8, 4608 }
  0x33   : > { %p4166_p7 = scmp.ne.s32.totalorder %s4411_s8, %s4165_s30  ;;  %s4170_s23 = scalar_lea.hbm %s5717_s1, 36864 }
  0x34   : > { %p4171_p13 = scmp.lt.u32.totalorder %s4411_s8, %s5717_s1  ;;  %p4172_p1 = scmp.lt.u32.totalorder %s4170_s23, %s4165_s30 }
  0x35   : > { %p4168_p8 = pnand %p4166_p7, %p4137_p0  ;;  %p4174_p4 = scmp.lt.u32.totalorder %s4165_s30, %s4411_s8 }
  0x36   : > { %p4173_p3 = por %p4172_p1, %p4171_p13 }
  0x37   : > { %p4169_p9 = pneg %p4168_p8 }
  0x38   : > { %p4175_p5 = por %p4174_p4, %p4173_p3 }
  0x3a   : > { %p4176_p10 = pnand %p4175_p5, %p4169_p9 }
  0x3c   : > { %4179 = shalt.err (!%p4176_p10)
}
  0x3d   : > { %s4180_s24 = scalar_lea.vmem %s4415_s16, 4608  ;;  %s4270_s6 = smov [#allocation9]  }
  0x3e   : > { %p4181_p11 = scmp.ne.s32.totalorder %s4415_s16, %s4180_s24  ;;  %s4185_s7 = sshll.u32 %s4270_s6, 4  ;;  %s4186_s7 = int_to_ptr.vmem [resolvable:$false] %s4185_s7 }
  0x3f   : > { %s4187_s14 = scalar_lea.vmem %s4186_s7, 9216  ;;  %p4188_p6 = scmp.lt.s32.totalorder %s4415_s16, %s4186_s7 }
  0x40   : > { %p4183_p7 = pnand %p4181_p11, %p4137_p0  ;;  %p4189_p13 = scmp.lt.s32.totalorder %s4187_s14, %s4180_s24 }
  0x42   : > { %p4184_p8 = pneg %p4183_p7  ;;  %p4190_p1 = por %p4189_p13, %p4188_p6 }
  0x44   : > { %p4191_p3 = pnand %p4190_p1, %p4184_p8 }
  0x46   : > { %4194 = shalt.err (!%p4191_p3)
}
  0x47   : > { %4079 = dma.hbm_to_vmem [thread:$0]  (!%p4361_p12), %s4411_s8, 4608, %s4415_s16, %s139_s27, %s4268_s29, %s4268_s29, %s4269_s4  }
  0x48   : > { %161 = sbr.rel (%p4402_p2) target bundleno = 1978 (0x7ba), region = 28 }
  0x4f   : > { %s4449_s30 = sand.u32 1, %s4257_s10   ;;  %p5825_p6 = scmp.ne.s32.totalorder %s5820_s19, 0 }
  0x50   : > { %s4066_s3 = smul.u32 288, %s4449_s30  ;;  %s164_s17 = scalar_lea.sflag [#allocation7], %s4449_s30 }
  0x52   : > { %s4453_s28 = scalar_lea.vmem [#allocation6], %s4066_s3 }
  0x53   : > { %4240 = dma.done.wait (%p5825_p6), %s164_s17, 4608  }
  0x54   : > { %4242 = vsyncadd (%p5825_p6), %s164_s17, 4294962688  ;;  %s173_s22 = scalar_lea.sflag [#allocation10], %s4449_s30  ;;  %s4460_s29 = scalar_lea.vmem [#allocation9], %s4066_s3 }
  0x55   : > { %4244 = dma.done.wait (%p5825_p6), %s173_s22, 4608  }
  0x56   : > { %4246 = vsyncadd (%p5825_p6), %s173_s22, 4294962688  ;;  %v239_v0 = vlaneseq  ;;  %v5739_v1 = vmov 0.0   ;;  %v4482_v11 = vld [vmem:[%s4453_s28 + $0x8] sm:$0xff]  ;;  %v4485_v12 = vld [vmem:[%s4453_s28 + $0x20] sm:$0xff]  ;;  %vm5722_vm0 = vcmask 785408   ;;  %v5735_v63 = vmov 1.0  }
  0x57   : > { %862 = vmatprep.mubr.f32.mxu0 %v5739_v1  ;;  %v4488_v13 = vld [vmem:[%s4453_s28 + $0x10] sm:$0xff]  ;;  %v3706_v14 = vpack.c.bf16 %v4485_v12, %v4482_v11  ;;  %v4493_v15 = vld [vmem:[%s4453_s28 + $0x28] sm:$0xff]  ;;  %v4496_v16 = vld [vmem:[%s4453_s28] sm:$0xff]  ;;  %vm5721_vm15 = vmmov 1   ;;  %s2865_s19 = sshll.u32 %s4449_s30, 4  ;;  %s3221_s8 = sshll.u32 %s4317_s13, 8 }
  0x58   : > { %v4467_v2 = vshrl.u32 %v239_v0, 7  ;;  %v4469_v3 = vand.u32 127, %v239_v0  ;;  %v4499_v17 = vld [vmem:[%s4453_s28 + $0x18] sm:$0xff]  ;;  %v3730_v20 = vpack.c.bf16 %v4493_v15, %v4488_v13  ;;  %v4509_v23 = vld [vmem:[%s4453_s28 + $0x50] sm:$0xff]  ;;  %v4512_v24 = vld [vmem:[%s4453_s28 + $0x40] sm:$0xff]  ;;  %v4567_v0 = vpack.c.bf16 %v5735_v63, %v5739_v1  ;;  %s201_s4 = scalar_lea.vmem [#allocation11], %s2865_s19  ;;  %s5673_s23 = scalar_lea.hbm %s5718_s2, %s3221_s8 }
  0x59   : > { %v3708_v21 = vpack.c.bf16 %v4499_v17, %v4496_v16  ;;  %v4506_v22 = vld [vmem:[%s4453_s28 + $0x38] sm:$0xff]  ;;  %3707 = vmatprep.subr.bf16.mxu0 %v3706_v14  ;;  %v4522_v29 = vld [vmem:[%s4453_s28 + $0x30] sm:$0xff]  ;;  %v4525_v30 = vld [vmem:[%s4453_s28 + $0x48] sm:$0xff]  ;;  %s2763_s5 = sshll.u32 %s201_s4, 4  ;;  %s2750_s25 = scalar_lea.sflag [#allocation8], %s4449_s30  ;;  %s5666_s5 = int_to_ptr.vmem [resolvable:$true] %s2763_s5 }
  0x5a   : > { %5826 = vst [vmem:[#allocation15_spill] sm:$0xff] %v4469_v3  ;;  %v4472_v4 = vadd.s32 4294967256, %v4469_v3  ;;  %v241_v5 = vadd.s32 8, %v4467_v2  ;;  %v316_v6 = vadd.s32 136, %v4467_v2  ;;  %v410_v10 = vsub.s32 %v4467_v2, %v4469_v3  ;;  %v4519_v28 = vld [vmem:[%s4453_s28 + $0x58] sm:$0xff]  ;;  %3731 = vmatprep.subr.bf16.mxu1 %v3730_v20  ;;  %v4532_v36 = vld [vmem:[%s4453_s28 + $0x68] sm:$0xff] }
  0x5b   : > { %v317_v26 = vadd.s32 144, %v4467_v2  ;;  %v3710_v27 = vpack.c.bf16 %v4509_v23, %v4506_v22  ;;  %3709 = vmatpush1.bf16.msra.mxu0 %v3708_v21  ;;  %v3734_v34 = vpack.c.bf16 %v4519_v28, %v4512_v24  ;;  %v3712_v35 = vpack.c.bf16 %v4525_v30, %v4522_v29  ;;  %v4535_v37 = vld [vmem:[%s4453_s28 + $0x80] sm:$0xff]  ;;  %v769_v38 = vld [vmem:[%s4453_s28 + $0x70] sm:$0xff]  ;;  %3733 = vmatpush3.bf16.msra.mxu1 %v3730_v20  ;;  %v772_v42 = vld [vmem:[%s4453_s28 + $0x88] sm:$0xff]  ;;  %s4195_s13 = scalar_lea.vmem %s5666_s5, 256  ;;  %p5992_p0 = scmp.ne.s32.totalorder %s5821_s20, 0 }
  0x5c   : > { %5827 = vst [vmem:[#allocation16_spill] sm:$0xff] %v4472_v4  ;;  %v289_v7 = vsub.s32 %v4467_v2, %v4472_v4  ;;  %v290_v8 = vsub.s32 %v241_v5, %v4472_v4  ;;  %v2889_v9 = vadd.s32 4294967168, %v316_v6  ;;  %v491_v33 = vsub.s32 0, %v410_v10  ;;  %5828 = vst [vmem:[#allocation17_spill] sm:$0xff] %v4535_v37  ;;  %v767_v43 = vld [vmem:[%s4453_s28 + $0x60] sm:$0xff]  ;;  %v770_v44 = vld [vmem:[%s4453_s28 + $0x78] sm:$0xff]  ;;  %p4196_p12 = scmp.ne.s32.totalorder %s5666_s5, %s4195_s13 }
  0x5d   : > { %v2874_v40 = vadd.s32 4294967168, %v241_v5  ;;  %3711 = vmatprep.subr.bf16.mxu0 %v3710_v27  ;;  %v3714_v41 = vpack.c.bf16 %v4535_v37, %v4532_v36  ;;  %v318_v45 = vadd.s32 152, %v4467_v2  ;;  %3735 = vmatprep.subr.bf16.mxu1 %v3734_v34  ;;  %v3738_v46 = vpack.c.bf16 %v772_v42, %v769_v38  ;;  %v774_v47 = vld [vmem:[%s4453_s28 + $0x98] sm:$0xff]  ;;  %v777_v48 = vld [vmem:[%s4453_s28 + $0xb0] sm:$0xff]  ;;  %v775_v49 = vld [vmem:[%s4453_s28 + $0xa0] sm:$0xff]  ;;  %s4278_s26 = smov [#allocation11]  }
  0x5e   : > { %v292_v18 = vsub.s32 0, %v289_v7  ;;  %v295_v19 = vsub.s32 0, %v290_v8  ;;  %v411_v25 = vsub.s32 %v2889_v9, %v4469_v3  ;;  %v778_v51 = vld [vmem:[%s4453_s28 + $0xb8] sm:$0xff]  ;;  %v773_v52 = vld [vmem:[%s4453_s28 + $0x90] sm:$0xff]  ;;  %v776_v53 = vld [vmem:[%s4453_s28 + $0xa8] sm:$0xff]  ;;  %v4555_v54 = vmin.u32 %v491_v33, %v410_v10  ;;  %p4197_p2 = pnand %p4196_p12, %p5992_p0  ;;  %s4199_s24 = sshll.u32 %s4278_s26, 4  ;;  %s4200_s24 = int_to_ptr.vmem [resolvable:$false] %s4199_s24 }
  0x5f   : > { %v303_v56 = vadd.s32 16, %v4467_v2  ;;  %v304_v57 = vadd.s32 24, %v4467_v2  ;;  %3713 = vmatpush1.bf16.msra.mxu0 %v3712_v35  ;;  %v3716_v58 = vpack.c.bf16 %v770_v44, %v767_v43  ;;  %v780_v59 = vld [vmem:[%s4453_s28 + $0xc8] sm:$0xff]  ;;  %v783_v60 = vld [vmem:[%s4453_s28 + $0xe0] sm:$0xff]  ;;  %v781_v61 = vld [vmem:[%s4453_s28 + $0xd0] sm:$0xff]  ;;  %v395_v62 = vsub.s32 %v2874_v40, %v4469_v3  ;;  %3737 = vmatpush3.bf16.msra.mxu1 %v3734_v34  ;;  %s4201_s6 = scalar_lea.vmem %s4200_s24, 512  ;;  %p4202_p4 = scmp.lt.s32.totalorder %s5666_s5, %s4200_s24 }
  0x60   : > { %v2869_v31 = vmin.u32 %v292_v18, %v289_v7  ;;  %v2870_v32 = vmin.u32 %v295_v19, %v290_v8  ;;  %v494_v39 = vsub.s32 0, %v411_v25  ;;  %v2890_v5 = vadd.s32 4294967168, %v317_v26  ;;  %3715 = vmatprep.subr.bf16.mxu0 %v3714_v41  ;;  %v784_v8 = vld [vmem:[%s4453_s28 + $0xe8] sm:$0xff]  ;;  %v779_v9 = vld [vmem:[%s4453_s28 + $0xc0] sm:$0xff]  ;;  %v782_v10 = vld [vmem:[%s4453_s28 + $0xd8] sm:$0xff]  ;;  %3739 = vmatprep.subr.bf16.mxu1 %v3738_v46  ;;  %p4198_p9 = pneg %p4197_p2  ;;  %p4203_p5 = scmp.lt.s32.totalorder %s4201_s6, %s4195_s13 }
  0x61   : > { %v3718_v6 = vpack.c.bf16 %v777_v48, %v774_v47  ;;  %v3742_v7 = vpack.c.bf16 %v778_v51, %v775_v49  ;;  %v2891_v18 = vadd.s32 4294967168, %v318_v45  ;;  %v3720_v19 = vpack.c.bf16 %v776_v53, %v773_v52  ;;  %v789_v26 = vld [vmem:[%s4453_s28 + $0x110] sm:$0xff]  ;;  %v787_v27 = vld [vmem:[%s4453_s28 + $0x100] sm:$0xff]  ;;  %v790_v33 = vld [vmem:[%s4453_s28 + $0x118] sm:$0xff] }
  0x62   : > { %vm297_vm1 = vcmp.le.s32.totalorder %v2869_v31, 40  ;;  %vm298_vm2 = vcmp.le.s32.totalorder %v2870_v32, 40  ;;  %v4557_v55 = vmin.u32 %v494_v39, %v411_v25  ;;  %v3722_v20 = vpack.c.bf16 %v783_v60, %v780_v59  ;;  %v786_v25 = vld [vmem:[%s4453_s28 + $0xf8] sm:$0xff]  ;;  %v785_v42 = vld [vmem:[%s4453_s28 + $0xf0] sm:$0xff]  ;;  %v788_v43 = vld [vmem:[%s4453_s28 + $0x108] sm:$0xff]  ;;  %p4204_p10 = por %p4203_p5, %p4202_p4 }
  0x63   : > { %v4548_v50 = vsel %vm297_vm1, 1.0, %v5739_v1  ;;  %v4574_v14 = vsel %vm298_vm2, 1.0, %v5739_v1  ;;  %v3746_v21 = vpack.c.bf16 %v784_v8, %v781_v61  ;;  %v412_v31 = vsub.s32 %v2890_v5, %v4469_v3  ;;  %3717 = vmatpush1.bf16.msra.mxu0 %v3716_v58  ;;  %3741 = vmatpush3.bf16.msra.mxu1 %v3738_v46  ;;  %v4937_v4 = vld [vmem:[%s4460_s29 + $0x98] sm:$0xff]  ;;  %v4961_v37 = vld [vmem:[%s4460_s29 + $0xe8] sm:$0xff] }
  0x64   : > { %3538 = vmatprep.mubr.msk.f32.mxu1 %vm5722_vm0, %v4548_v50  ;;  %vm602_vm3 = vcmp.le.s32.totalorder %v4555_v54, 40  ;;  %vm603_vm4 = vcmp.le.s32.totalorder %v4557_v55, 40  ;;  %v4583_v32 = vsub.s32 0, %v395_v62  ;;  %v413_v34 = vsub.s32 %v2891_v18, %v4469_v3  ;;  %3719 = vmatprep.subr.bf16.mxu0 %v3718_v6  ;;  %5887 = vst [vmem:[#allocation35_spill] sm:$0xff] %v4937_v4  ;;  %5893 = vst [vmem:[#allocation39_spill] sm:$0xff] %v4961_v37  ;;  %p4205_p11 = pnand %p4204_p10, %p4198_p9 }
  0x65   : > { %v2875_v35 = vadd.s32 4294967168, %v303_v56  ;;  %v2876_v38 = vadd.s32 4294967168, %v304_v57  ;;  %v3724_v39 = vpack.c.bf16 %v782_v10, %v779_v9  ;;  %v3726_v40 = vpack.c.bf16 %v789_v26, %v786_v25  ;;  %3743 = vmatprep.subr.bf16.mxu1 %v3742_v7  ;;  %vm4624_vm8 = vmpackc.low %vm603_vm4, %vm602_vm3 }
  0x66   : > { %v4586_v41 = vpack.c.bf16 %v790_v33, %v787_v27  ;;  %v497_v44 = vsub.s32 0, %v412_v31  ;;  %v500_v45 = vsub.s32 0, %v413_v34  ;;  %v319_v49 = vadd.s32 160, %v4467_v2 }
  0x67   : > { %v396_v47 = vsub.s32 %v2875_v35, %v4469_v3  ;;  %v397_v48 = vsub.s32 %v2876_v38, %v4469_v3  ;;  %v320_v52 = vadd.s32 168, %v4467_v2  ;;  %v242_v53 = vadd.s32 40, %v4467_v2  ;;  %3721 = vmatpush1.bf16.msra.mxu0 %v3720_v19  ;;  %3745 = vmatpush3.bf16.msra.mxu1 %v3742_v7 }
  0x68   : > { %v4593_v51 = vmin.u32 %v497_v44, %v412_v31  ;;  %v305_v56 = vadd.s32 32, %v4467_v2  ;;  %v3728_v57 = vpack.c.bf16 %v788_v43, %v785_v42  ;;  %vm587_vm5 = vcmp.le.s32.totalorder %v4583_v32, 40  ;;  %3723 = vmatprep.subr.bf16.mxu0 %v3722_v20  ;;  %3747 = vmatprep.subr.bf16.mxu1 %v3746_v21 }
  0x69   : > { %v4599_v46 = vmin.u32 %v500_v45, %v413_v34  ;;  %v2892_v58 = vadd.s32 4294967168, %v319_v49  ;;  %v4601_v59 = vsub.s32 0, %v396_v47  ;;  %v2893_v60 = vadd.s32 4294967168, %v320_v52  ;;  %vm4650_vm1 = vmpackc.low %vm587_vm5, %vm5721_vm15 }
  0x6a   : > { %v2877_v61 = vadd.s32 4294967168, %v305_v56  ;;  %v2878_v62 = vadd.s32 4294967168, %v242_v53  ;;  %vm604_vm6 = vcmp.le.s32.totalorder %v4593_v51, 40  ;;  %v4605_v5 = vsub.s32 0, %v397_v48 }
  0x6b   : > { %vm605_vm7 = vcmp.le.s32.totalorder %v4599_v46, 40  ;;  %v414_v6 = vsub.s32 %v2892_v58, %v4469_v3  ;;  %v415_v8 = vsub.s32 %v2893_v60, %v4469_v3  ;;  %v321_v18 = vadd.s32 176, %v4467_v2  ;;  %3725 = vmatpush1.bf16.msra.mxu0 %v3724_v39  ;;  %3749 = vmatpush3.bf16.msra.mxu1 %v3746_v21 }
  0x6c   : > { %v398_v9 = vsub.s32 %v2877_v61, %v4469_v3  ;;  %v399_v10 = vsub.s32 %v2878_v62, %v4469_v3  ;;  %v322_v7 = vadd.s32 184, %v4467_v2  ;;  %v306_v20 = vadd.s32 48, %v4467_v2  ;;  %3727 = vmatprep.subr.bf16.mxu0 %v3726_v40  ;;  %3751 = vmatprep.subr.bf16.mxu1 %v4586_v41  ;;  %vm4661_vm2 = vmpackc.low %vm605_vm7, %vm604_vm6 }
  0x6d   : > { %v503_v19 = vsub.s32 0, %v414_v6  ;;  %v307_v25 = vadd.s32 56, %v4467_v2  ;;  %v506_v26 = vsub.s32 0, %v415_v8  ;;  %v2894_v33 = vadd.s32 4294967168, %v321_v18 }
  0x6e   : > { %v4615_v27 = vsub.s32 0, %v398_v9  ;;  %v4617_v31 = vsub.s32 0, %v399_v10  ;;  %v2895_v35 = vadd.s32 4294967168, %v322_v7  ;;  %v2879_v38 = vadd.s32 4294967168, %v306_v20 }
  0x6f   : > { %v2924_v34 = vmin.u32 %v503_v19, %v414_v6  ;;  %v2880_v42 = vadd.s32 4294967168, %v307_v25  ;;  %vm588_vm9 = vcmp.le.s32.totalorder %v4601_v59, 40  ;;  %vm589_vm10 = vcmp.le.s32.totalorder %v4605_v5, 40  ;;  %3729 = vmatpush1.bf16.msra.mxu0 %v3728_v57  ;;  %3753 = vmatpush3.bf16.msra.mxu1 %v4586_v41 }
  0x70   : > { %v2925_v21 = vmin.u32 %v506_v26, %v415_v8  ;;  %v416_v40 = vsub.s32 %v2894_v33, %v4469_v3  ;;  %vm590_vm12 = vcmp.le.s32.totalorder %v4615_v27, 40  ;;  %vm591_vm13 = vcmp.le.s32.totalorder %v4617_v31, 40  ;;  %vm4685_vm7 = vmpackc.low %vm589_vm10, %vm588_vm9 }
  0x71   : > { %vm606_vm11 = vcmp.le.s32.totalorder %v2924_v34, 40  ;;  %v417_v54 = vsub.s32 %v2895_v35, %v4469_v3  ;;  %v400_v55 = vsub.s32 %v2879_v38, %v4469_v3  ;;  %v401_v43 = vsub.s32 %v2880_v42, %v4469_v3  ;;  %vm4712_vm10 = vmpackc.low %vm591_vm13, %vm590_vm12 }
  0x72   : > { %vm607_vm14 = vcmp.le.s32.totalorder %v2925_v21, 40  ;;  %v509_v44 = vsub.s32 0, %v416_v40  ;;  %v323_v45 = vadd.s32 192, %v4467_v2  ;;  %v324_v47 = vadd.s32 200, %v4467_v2  ;;  %2972 = vmatmul.mubr.msk.f32.vlgmr.msra.gmra.mrb[0].mxu0 %vm5722_vm0, %v4548_v50  ;;  %3539 = vmatmul.mubr.msk.f32.vlgmr.msra.gmra.mrb[0].mxu1 %vm5722_vm0, %v4574_v14 }
  0x73   : > { %v5737_v48 = vmov 1.0|1.0   ;;  %v512_v49 = vsub.s32 0, %v417_v54  ;;  %v4642_v52 = vsub.s32 0, %v400_v55  ;;  %v4644_v53 = vsub.s32 0, %v401_v43  ;;  %868 = vmatprep.mubr.f32.mxu0 %v5739_v1  ;;  %vm4695_vm15 = vmpackc.low %vm607_vm14, %vm606_vm11 }
  0x74   : > { %3755 = vmatprep.subr.msk.bf16.mxu0 %vm4624_vm8, %v5737_v48  ;;  %v308_v56 = vadd.s32 64, %v4467_v2  ;;  %v2926_v41 = vmin.u32 %v509_v44, %v416_v40  ;;  %v2896_v58 = vadd.s32 4294967168, %v323_v45  ;;  %v2897_v60 = vadd.s32 4294967168, %v324_v47 }
  0x75   : > { %v309_v61 = vadd.s32 72, %v4467_v2  ;;  %v5833_v62 = vmov 0  ;;  %v2927_v32 = vmin.u32 %v512_v49, %v417_v54  ;;  %vm592_vm3 = vcmp.le.s32.totalorder %v4642_v52, 40  ;;  %3758 = vmatpush3.bf16.msk.msra.mxu0 %vm4650_vm1, %v4567_v0 }
  0x76   : > { %v5834_v62 = vsel %vm4661_vm2, 4294967295, %v5833_v62  ;;  %vm593_vm4 = vcmp.le.s32.totalorder %v4644_v53, 40  ;;  %v2881_v6 = vadd.s32 4294967168, %v308_v56  ;;  %vm608_vm5 = vcmp.le.s32.totalorder %v2926_v41, 40  ;;  %3760 = vmatprep.subr.msk.bf16.mxu0 %vm4661_vm2, %v5737_v48  ;;  %2973 = vmatmul.mubr.msk.f32.gmra.mrb[2].mxu0 %vm5722_vm0, %v4574_v14 }
  0x77   : > { %v418_v51 = vsub.s32 %v2896_v58, %v4469_v3  ;;  %v419_v46 = vsub.s32 %v2897_v60, %v4469_v3  ;;  %v2882_v8 = vadd.s32 4294967168, %v309_v61  ;;  %vm609_vm6 = vcmp.le.s32.totalorder %v2927_v32, 40  ;;  %vm4738_vm12 = vmpackc.low %vm593_vm4, %vm592_vm3 }
  0x78   : > { %v402_v9 = vsub.s32 %v2881_v6, %v4469_v3  ;;  %v325_v10 = vadd.s32 208, %v4467_v2  ;;  %v326_v18 = vadd.s32 216, %v4467_v2  ;;  %v5835_v19 = vmov 0  ;;  %vm4719_vm9 = vmpackc.low %vm609_vm6, %vm608_vm5 }
  0x79   : > { %v5836_v19 = vsel %vm4685_vm7, 4294967295, %v5835_v19  ;;  %v515_v7 = vsub.s32 0, %v418_v51  ;;  %v518_v20 = vsub.s32 0, %v419_v46  ;;  %v403_v25 = vsub.s32 %v2882_v8, %v4469_v3  ;;  %3762 = vmatpush3.bf16.msk.msra.mxu0 %vm4685_vm7, %v5737_v48 }
  0x7a   : > { %v310_v26 = vadd.s32 80, %v4467_v2  ;;  %v5837_v33 = vmov 0  ;;  %v467_v59 = vsub.s32 0, %v402_v9  ;;  %v2898_v5 = vadd.s32 4294967168, %v325_v10  ;;  %3764 = vmatprep.subr.msk.bf16.mxu0 %vm4695_vm15, %v5737_v48 }
  0x7b   : > { %v5838_v33 = vsel %vm4695_vm15, 4294967295, %v5837_v33  ;;  %v2899_v35 = vadd.s32 4294967168, %v326_v18  ;;  %v311_v38 = vadd.s32 88, %v4467_v2  ;;  %v2928_v42 = vmin.u32 %v515_v7, %v418_v51 }
  0x7c   : > { %v2929_v40 = vmin.u32 %v518_v20, %v419_v46  ;;  %v470_v54 = vsub.s32 0, %v403_v25  ;;  %v2883_v55 = vadd.s32 4294967168, %v310_v26  ;;  %v420_v34 = vsub.s32 %v2898_v5, %v4469_v3 }
  0x7d   : > { %v421_v21 = vsub.s32 %v2899_v35, %v4469_v3  ;;  %v2884_v43 = vadd.s32 4294967168, %v311_v38  ;;  %v5839_v44 = vmov 0  ;;  %vm610_vm11 = vcmp.le.s32.totalorder %v2928_v42, 40  ;;  %3766 = vmatpush3.bf16.msk.msra.mxu0 %vm4712_vm10, %v5737_v48 }
  0x7e   : > { %v5840_v44 = vsel %vm4712_vm10, 4294967295, %v5839_v44  ;;  %vm611_vm14 = vcmp.le.s32.totalorder %v2929_v40, 40  ;;  %v404_v45 = vsub.s32 %v2883_v55, %v4469_v3  ;;  %v5841_v47 = vmov 0  ;;  %3768 = vmatprep.subr.msk.bf16.mxu0 %vm4719_vm9, %v5737_v48 }
  0x7f   : > { %v5842_v47 = vsel %vm4719_vm9, 4294967295, %v5841_v47  ;;  %v521_v49 = vsub.s32 0, %v420_v34  ;;  %v524_v56 = vsub.s32 0, %v421_v21  ;;  %v405_v27 = vsub.s32 %v2884_v43, %v4469_v3  ;;  %vm4744_vm5 = vmpackc.low %vm611_vm14, %vm610_vm11 }
  0x80   : > { %v331_v31 = vadd.s32 256, %v4467_v2  ;;  %v473_v58 = vsub.s32 0, %v404_v45  ;;  %v332_v60 = vadd.s32 264, %v4467_v2  ;;  %v327_v61 = vadd.s32 224, %v4467_v2 }
  0x81   : > { %v328_v6 = vadd.s32 232, %v4467_v2  ;;  %v2930_v41 = vmin.u32 %v521_v49, %v420_v34  ;;  %v2931_v32 = vmin.u32 %v524_v56, %v421_v21  ;;  %v476_v51 = vsub.s32 0, %v405_v27  ;;  %3770 = vmatpush3.bf16.msk.msra.mxu0 %vm4738_vm12, %v5737_v48 }
  0x82   : > { %v2904_v46 = vadd.s32 4294967168, %v331_v31  ;;  %v5843_v8 = vmov 0  ;;  %vm596_vm13 = vcmp.le.s32.totalorder %v473_v58, 40  ;;  %v2905_v9 = vadd.s32 4294967168, %v332_v60  ;;  %3772 = vmatprep.subr.msk.bf16.mxu0 %vm4744_vm5, %v5737_v48 }
  0x83   : > { %v5844_v8 = vsel %vm4738_vm12, 4294967295, %v5843_v8  ;;  %v2900_v10 = vadd.s32 4294967168, %v327_v61  ;;  %v2901_v18 = vadd.s32 4294967168, %v328_v6  ;;  %v5845_v7 = vmov 0 }
  0x84   : > { %v5846_v7 = vsel %vm4744_vm5, 4294967295, %v5845_v7  ;;  %vm612_vm6 = vcmp.le.s32.totalorder %v2930_v41, 40  ;;  %vm613_vm0 = vcmp.le.s32.totalorder %v2931_v32, 40  ;;  %v426_v52 = vsub.s32 %v2904_v46, %v4469_v3 }
  0x85   : > { %v427_v53 = vsub.s32 %v2905_v9, %v4469_v3  ;;  %v422_v20 = vsub.s32 %v2900_v10, %v4469_v3  ;;  %v423_v25 = vsub.s32 %v2901_v18, %v4469_v3  ;;  %v312_v26 = vadd.s32 96, %v4467_v2  ;;  %vm4769_vm9 = vmpackc.low %vm613_vm0, %vm612_vm6 }
  0x86   : > { %vm5847_vm3 = vcmp.le.s32.totalorder %v467_v59, 40  ;;  %vm5848_vm4 = vcmp.le.s32.totalorder %v470_v54, 40  ;;  %v5849_v5 = vmov 0  ;;  %vm618_vm14 = vcmp.le.s32.totalorder %v426_v52, 40 }
  0x87   : > { %vm4758_vm11 = vmpackc.low %vm5848_vm4, %vm5847_vm3  ;;  %v313_v35 = vadd.s32 104, %v4467_v2  ;;  %v333_v38 = vadd.s32 272, %v4467_v2  ;;  %v334_v42 = vadd.s32 280, %v4467_v2  ;;  %v5851_v40 = vmov 0 }
  0x88   : > { %v5850_v5 = vsel %vm4758_vm11, 4294967295, %v5849_v5  ;;  %v5852_v40 = vsel %vm4769_vm9, 4294967295, %v5851_v40  ;;  %vm619_vm3 = vcmp.le.s32.totalorder %v427_v53, 40  ;;  %v527_v59 = vsub.s32 0, %v422_v20  ;;  %3774 = vmatpush3.bf16.msk.msra.mxu0 %vm4758_vm11, %v5737_v48 }
  0x89   : > { %5853 = vst [vmem:[#allocation18_spill] sm:$0xff] %v5852_v40  ;;  %v530_v54 = vsub.s32 0, %v423_v25  ;;  %v2885_v55 = vadd.s32 4294967168, %v312_v26  ;;  %vm4773_vm4 = vmpackc.low %vm619_vm3, %vm618_vm14  ;;  %v5854_v34 = vmov 0  ;;  %v2886_v21 = vadd.s32 4294967168, %v313_v35  ;;  %3776 = vmatprep.subr.msk.bf16.mxu0 %vm4769_vm9, %v5737_v48 }
  0x8a   : > { %v5855_v34 = vsel %vm4773_vm4, 4294967295, %v5854_v34  ;;  %v2906_v43 = vadd.s32 4294967168, %v333_v38  ;;  %v2907_v45 = vadd.s32 4294967168, %v334_v42  ;;  %v329_v49 = vadd.s32 240, %v4467_v2  ;;  %3788 = vmatprep.subr.msk.bf16.mxu1 %vm4773_vm4, %v5737_v48 }
  0x8b   : > { %5856 = vst [vmem:[#allocation19_spill] sm:$0xff] %v5855_v34  ;;  %v2932_v56 = vmin.u32 %v527_v59, %v422_v20  ;;  %v2933_v27 = vmin.u32 %v530_v54, %v423_v25  ;;  %v406_v31 = vsub.s32 %v2885_v55, %v4469_v3  ;;  %v330_v60 = vadd.s32 248, %v4467_v2  ;;  %3790 = vmatpush3.bf16.msk.msra.mxu1 %vm4773_vm4, %v5737_v48 }
  0x8c   : > { %v407_v61 = vsub.s32 %v2886_v21, %v4469_v3  ;;  %v428_v6 = vsub.s32 %v2906_v43, %v4469_v3  ;;  %v429_v41 = vsub.s32 %v2907_v45, %v4469_v3  ;;  %v2902_v32 = vadd.s32 4294967168, %v329_v49 }
  0x8d   : > { %vm5857_vm0 = vcmp.le.s32.totalorder %v476_v51, 40  ;;  %v5858_v46 = vmov 0  ;;  %vm614_vm14 = vcmp.le.s32.totalorder %v2932_v56, 40  ;;  %vm615_vm3 = vcmp.le.s32.totalorder %v2933_v27, 40 }
  0x8e   : > { %vm4797_vm6 = vmpackc.low %vm5857_vm0, %vm596_vm13  ;;  %v479_v9 = vsub.s32 0, %v406_v31  ;;  %v2903_v10 = vadd.s32 4294967168, %v330_v60  ;;  %v5861_v18 = vmov 0  ;;  %v482_v52 = vsub.s32 0, %v407_v61 }
  0x8f   : > { %v5859_v46 = vsel %vm4797_vm6, 4294967295, %v5858_v46  ;;  %vm4801_vm11 = vmpackc.low %vm615_vm3, %vm614_vm14  ;;  %vm620_vm5 = vcmp.le.s32.totalorder %v428_v6, 40  ;;  %vm621_vm12 = vcmp.le.s32.totalorder %v429_v41, 40  ;;  %v424_v53 = vsub.s32 %v2902_v32, %v4469_v3  ;;  %3778 = vmatpush3.bf16.msk.msra.mxu0 %vm4797_vm6, %v5737_v48  ;;  %v4855_v41 = vld [vmem:[%s4460_s29 + $0x8] sm:$0xff]  ;;  %v4858_v32 = vld [vmem:[%s4460_s29 + $0x20] sm:$0xff] }
  0x90   : > { %5860 = vst [vmem:[#allocation20_spill] sm:$0xff] %v5859_v46  ;;  %v5862_v18 = vsel %vm4801_vm11, 4294967295, %v5861_v18  ;;  %vm598_vm9 = vcmp.le.s32.totalorder %v479_v9, 40  ;;  %vm4806_vm10 = vmpackc.low %vm621_vm12, %vm620_vm5  ;;  %v5864_v58 = vmov 0  ;;  %v425_v51 = vsub.s32 %v2903_v10, %v4469_v3  ;;  %3780 = vmatprep.subr.msk.bf16.mxu0 %vm4801_vm11, %v5737_v48  ;;  %v4861_v9 = vld [vmem:[%s4460_s29 + $0x10] sm:$0xff]  ;;  %v4869_v10 = vld [vmem:[%s4460_s29 + $0x28] sm:$0xff] }
  0x91   : > { %5863 = vst [vmem:[#allocation21_spill] sm:$0xff] %v5862_v18  ;;  %v5865_v58 = vsel %vm4806_vm10, 4294967295, %v5864_v58  ;;  %v314_v20 = vadd.s32 112, %v4467_v2  ;;  %v315_v25 = vadd.s32 120, %v4467_v2  ;;  %vm599_vm13 = vcmp.le.s32.totalorder %v482_v52, 40  ;;  %3792 = vmatprep.subr.msk.bf16.mxu1 %vm4806_vm10, %v5737_v48 }
  0x92   : > { %5866 = vst [vmem:[#allocation22_spill] sm:$0xff] %v5865_v58  ;;  %v533_v26 = vsub.s32 0, %v424_v53  ;;  %vm4822_vm12 = vmpackc.low %vm599_vm13, %vm598_vm9  ;;  %v5867_v35 = vmov 0  ;;  %3794 = vmatpush3.bf16.msk.msra.mxu1 %vm4806_vm10, %v5737_v48  ;;  %v536_v38 = vsub.s32 0, %v425_v51  ;;  %v5870_v56 = vmov 0 }
  0x93   : > { %v5868_v35 = vsel %vm4822_vm12, 4294967295, %v5867_v35  ;;  %v2887_v42 = vadd.s32 4294967168, %v314_v20  ;;  %v2888_v59 = vadd.s32 4294967168, %v315_v25  ;;  %3782 = vmatpush3.bf16.msk.msra.mxu0 %vm4822_vm12, %v5737_v48  ;;  %v5873_v27 = vmov 0  ;;  %v4883_v20 = vld [vmem:[%s4460_s29 + $0x40] sm:$0xff]  ;;  %v4886_v25 = vld [vmem:[%s4460_s29 + $0x58] sm:$0xff] }
  0x94   : > { %5869 = vst [vmem:[#allocation23_spill] sm:$0xff] %v5868_v35  ;;  %v2934_v54 = vmin.u32 %v533_v26, %v424_v53  ;;  %v2935_v55 = vmin.u32 %v536_v38, %v425_v51  ;;  %v335_v31 = vadd.s32 288, %v4467_v2  ;;  %v5876_v6 = vmov 0  ;;  %v4877_v53 = vld [vmem:[%s4460_s29] sm:$0xff]  ;;  %v4880_v51 = vld [vmem:[%s4460_s29 + $0x18] sm:$0xff]  ;;  %v4892_v38 = vld [vmem:[%s4460_s29 + $0x50] sm:$0xff] }
  0x95   : > { %v408_v21 = vsub.s32 %v2887_v42, %v4469_v3  ;;  %v409_v43 = vsub.s32 %v2888_v59, %v4469_v3  ;;  %v3795_v2 = vpack.c.bf16 %v4858_v32, %v4855_v41  ;;  %v3819_v52 = vpack.c.bf16 %v4869_v10, %v4861_v9  ;;  %v4889_v26 = vld [vmem:[%s4460_s29 + $0x38] sm:$0xff] }
  0x96   : > { %vm616_vm9 = vcmp.le.s32.totalorder %v2934_v54, 40  ;;  %vm617_vm5 = vcmp.le.s32.totalorder %v2935_v55, 40  ;;  %v2908_v60 = vadd.s32 4294967168, %v335_v31  ;;  %v3797_v55 = vpack.c.bf16 %v4880_v51, %v4877_v53  ;;  %v4904_v31 = vld [vmem:[%s4460_s29 + $0x48] sm:$0xff] }
  0x97   : > { %v485_v45 = vsub.s32 0, %v408_v21  ;;  %v488_v49 = vsub.s32 0, %v409_v43  ;;  %vm4834_vm0 = vmpackc.low %vm617_vm5, %vm616_vm9  ;;  %v3823_v21 = vpack.c.bf16 %v4886_v25, %v4883_v20  ;;  %v4899_v43 = vld [vmem:[%s4460_s29 + $0x30] sm:$0xff]  ;;  %vm5890_vm5 = vcmask 785408  }
  0x98   : > { %v5871_v56 = vsel %vm4834_vm0, 4294967295, %v5870_v56  ;;  %3784 = vmatprep.subr.msk.bf16.mxu0 %vm4834_vm0, %v5737_v48  ;;  %v430_v61 = vsub.s32 %v2908_v60, %v4469_v3  ;;  %v4907_v60 = vld [vmem:[%s4460_s29 + $0x70] sm:$0xff]  ;;  %v3801_v1 = vpack.c.bf16 %v4904_v31, %v4899_v43  ;;  %v4934_v3 = vld [vmem:[%s4460_s29 + $0xb8] sm:$0xff] }
  0x99   : > { %5872 = vst [vmem:[#allocation24_spill] sm:$0xff] %v5871_v56  ;;  %vm600_vm14 = vcmp.le.s32.totalorder %v485_v45, 40  ;;  %vm601_vm3 = vcmp.le.s32.totalorder %v488_v49, 40  ;;  %v3799_v49 = vpack.c.bf16 %v4892_v38, %v4889_v26  ;;  %5879 = vst [vmem:[#allocation27_spill] sm:$0xff] %v4907_v60 }
  0x9a   : > { %vm4841_vm13 = vmpackc.low %vm601_vm3, %vm600_vm14  ;;  %vm4850_vm9 = vcmp.le.s32.totalorder %v430_v61, 40  ;;  %v4910_v61 = vld [vmem:[%s4460_s29 + $0x88] sm:$0xff]  ;;  %5886 = vst [vmem:[#allocation34_spill] sm:$0xff] %v4934_v3 }
  0x9b   : > { %v5874_v27 = vsel %vm4841_vm13, 4294967295, %v5873_v27  ;;  %3786 = vmatpush3.bf16.msk.msra.mxu0 %vm4841_vm13, %v5737_v48  ;;  %v5877_v6 = vsel %vm4850_vm9, 4294967295, %v5876_v6  ;;  %3549 = vmatprep.subr.msk.mxu1 %vm4850_vm9, %v5735_v63  ;;  %5880 = vst [vmem:[#allocation28_spill] sm:$0xff] %v4910_v61  ;;  %vm5897_vm14 = vmmov %vm5890_vm5 }
  0x9c   : > { %5875 = vst [vmem:[#allocation25_spill] sm:$0xff] %v5874_v27  ;;  %5878 = vst [vmem:[#allocation26_spill] sm:$0xff] %v5877_v6  ;;  %3550 = vmatpush3.msk.msra.mxu1 %vm4850_vm9, %v5735_v63  ;;  %3820 = vmatprep.subr.bf16.mxu0 %v3819_v52  ;;  %v4916_v63 = vld [vmem:[%s4460_s29 + $0x80] sm:$0xff] }
  0x9d   : > { %3796 = vmatprep.subr.bf16.mxu1 %v3795_v2  ;;  %v4913_v2 = vld [vmem:[%s4460_s29 + $0x68] sm:$0xff]  ;;  %5882 = vst [vmem:[#allocation30_spill] sm:$0xff] %v4916_v63  ;;  %vm5898_vm3 = vmmov %vm5890_vm5 }
  0x9e   : > { %5881 = vst [vmem:[#allocation29_spill] sm:$0xff] %v4913_v2 }
 0x145   : > { %v864_v42 = vpop.f32.mrb[0].mxu0  ;;  %v3540_v59 = vpop.f32.mrb[0].mxu1 }
 0x146   : > { %v866_v54 = vpop.f32.mrb[1].mxu0  ;;  %v941_v45 = vpop.f32.mrb[1].mxu1 }
 0x147   : > { %1014 = vmatprep.mubr.f32.mxu0 %v866_v54  ;;  %3551 = vmatprep.mubr.f32.mxu1 %v941_v45  ;;  %v4923_v45 = vld [vmem:[%s4460_s29 + $0x60] sm:$0xff] }
 0x148   : > { %1015 = vmatmul.mubr.f32.vlgmr.msra.gmra.mrb[4].mxu0 %v864_v42  ;;  %3552 = vmatmul.mubr.f32.vlgmr.msra.gmra.mrb[2].mxu1 %v3540_v59  ;;  %v3827_v42 = vpack.c.bf16 %v4910_v61, %v4907_v60  ;;  %5883 = vst [vmem:[#allocation31_spill] sm:$0xff] %v4923_v45  ;;  %v3803_v59 = vpack.c.bf16 %v4916_v63, %v4913_v2  ;;  %v4950_v60 = vld [vmem:[%s4460_s29 + $0x90] sm:$0xff]  ;;  %v4955_v63 = vld [vmem:[%s4460_s29 + $0xa8] sm:$0xff]  ;;  %v4982_v2 = vld [vmem:[%s4460_s29 + $0x100] sm:$0xff] }
 0x149   : > { %3822 = vmatpush3.bf16.msra.mxu0 %v3819_v52  ;;  %v870_v54 = vpop.f32.mrb[2].mxu0  ;;  %3798 = vmatpush1.bf16.msra.mxu1 %v3797_v55  ;;  %v4928_v52 = vld [vmem:[%s4460_s29 + $0x78] sm:$0xff]  ;;  %v4931_v55 = vld [vmem:[%s4460_s29 + $0xa0] sm:$0xff]  ;;  %5891 = vst [vmem:[#allocation37_spill] sm:$0xff] %v4955_v63 }
 0x14a   : > { %v872_v48 = vpop.f32.mrb[3].mxu0  ;;  %3824 = vmatprep.subr.bf16.mxu0 %v3823_v21  ;;  %3800 = vmatprep.subr.bf16.mxu1 %v3799_v49  ;;  %5884 = vst [vmem:[#allocation32_spill] sm:$0xff] %v4928_v52  ;;  %5885 = vst [vmem:[#allocation33_spill] sm:$0xff] %v4931_v55  ;;  %v5889_v49 = vmov 0.0   ;;  %v3805_v61 = vpack.c.bf16 %v4928_v52, %v4923_v45  ;;  %v4964_v52 = vld [vmem:[%s4460_s29 + $0xc8] sm:$0xff]  ;;  %v4979_v45 = vld [vmem:[%s4460_s29 + $0xd8] sm:$0xff] }
 0x14b   : > { %1019 = vmatprep.mubr.f32.mxu0 %v872_v48  ;;  %v4940_v48 = vld [vmem:[%s4460_s29 + $0xb0] sm:$0xff]  ;;  %1206 = vmatprep.mubr.f32.mxu1 %v5889_v49  ;;  %5894 = vst [vmem:[#allocation40_spill] sm:$0xff] %v4964_v52 }
 0x14c   : > { %1020 = vmatmul.mubr.f32.gmra.mrb[6].mxu0 %v870_v54  ;;  %5888 = vst [vmem:[#allocation36_spill] sm:$0xff] %v4940_v48  ;;  %v3831_v54 = vpack.c.bf16 %v4934_v3, %v4931_v55  ;;  %v4967_v3 = vld [vmem:[%s4460_s29 + $0xe0] sm:$0xff] }
 0x14d   : > { %3826 = vmatpush3.bf16.msra.mxu0 %v3823_v21  ;;  %3578 = vmatprep.mubr.msk.f32.mxu0 %vm5890_vm5, %v4548_v50  ;;  %v3807_v21 = vpack.c.bf16 %v4940_v48, %v4937_v4  ;;  %5895 = vst [vmem:[#allocation41_spill] sm:$0xff] %v4967_v3  ;;  %v4974_v48 = vld [vmem:[%s4460_s29 + $0xc0] sm:$0xff]  ;;  %v3811_v4 = vpack.c.bf16 %v4967_v3, %v4964_v52  ;;  %v5000_v3 = vld [vmem:[%s4460_s29 + $0xf0] sm:$0xff]  ;;  %v5003_v52 = vld [vmem:[%s4460_s29 + $0x108] sm:$0xff] }
 0x14e   : > { %3802 = vmatpush1.bf16.msra.mxu1 %v3801_v1  ;;  %3828 = vmatprep.subr.bf16.mxu0 %v3827_v42  ;;  %v4958_v1 = vld [vmem:[%s4460_s29 + $0xd0] sm:$0xff]  ;;  %vm5899_vm5 = vmmov %vm5898_vm3 }
 0x14f   : > { %3804 = vmatprep.subr.bf16.mxu1 %v3803_v59  ;;  %5892 = vst [vmem:[#allocation38_spill] sm:$0xff] %v4958_v1  ;;  %v3809_v59 = vpack.c.bf16 %v4955_v63, %v4950_v60  ;;  %v3835_v55 = vpack.c.bf16 %v4961_v37, %v4958_v1  ;;  %v4991_v63 = vld [vmem:[%s4460_s29 + $0x110] sm:$0xff]  ;;  %v3813_v37 = vpack.c.bf16 %v4979_v45, %v4974_v48 }
 0x151   : > { %3830 = vmatpush3.bf16.msra.mxu0 %v3827_v42  ;;  %v4988_v42 = vld [vmem:[%s4460_s29 + $0xf8] sm:$0xff] }
 0x152   : > { %3806 = vmatpush1.bf16.msra.mxu1 %v3805_v61  ;;  %3832 = vmatprep.subr.bf16.mxu0 %v3831_v54  ;;  %v4985_v61 = vld [vmem:[%s4460_s29 + $0x118] sm:$0xff]  ;;  %v3815_v1 = vpack.c.bf16 %v4991_v63, %v4988_v42 }
 0x153   : > { %3808 = vmatprep.subr.bf16.mxu1 %v3807_v21  ;;  %v3839_v21 = vpack.c.bf16 %v4985_v61, %v4982_v2 }
 0x155   : > { %3834 = vmatpush3.bf16.msra.mxu0 %v3831_v54  ;;  %v3817_v54 = vpack.c.bf16 %v5003_v52, %v5000_v3 }
 0x156   : > { %3810 = vmatpush1.bf16.msra.mxu1 %v3809_v59  ;;  %3836 = vmatprep.subr.bf16.mxu0 %v3835_v55  ;;  %v5896_v59 = vmov 1.0|1.0  }
 0x157   : > { %3812 = vmatprep.subr.bf16.mxu1 %v3811_v4  ;;  %v5900_v4 = vmov 1.0  }
 0x159   : > { %3838 = vmatpush3.bf16.msra.mxu0 %v3835_v55  ;;  %v1526_v55 = vmul.f32 %v4858_v32, %v4485_v12 }
 0x15a   : > { %3814 = vmatpush1.bf16.msra.mxu1 %v3813_v37  ;;  %3840 = vmatprep.subr.bf16.mxu0 %v3839_v21  ;;  %v1523_v37 = vmul.f32 %v4855_v41, %v4482_v11 }
 0x15b   : > { %3816 = vmatprep.subr.bf16.mxu1 %v3815_v1  ;;  %v1524_v1 = vmul.f32 %v4861_v9, %v4488_v13  ;;  %v1525_v9 = vmul.f32 %v4880_v51, %v4499_v17 }
 0x15d   : > { %3842 = vmatpush3.bf16.msra.mxu0 %v3839_v21  ;;  %v1527_v21 = vmul.f32 %v4869_v10, %v4493_v15  ;;  %v1522_v15 = vmul.f32 %v4877_v53, %v4496_v16  ;;  %v1529_v10 = vmul.f32 %v4889_v26, %v4506_v22  ;;  %v5108_v16 = vld [vmem:[%s4453_s28 + $0x88] sm:$0xff]  ;;  %v1528_v22 = vmul.f32 %v4899_v43, %v4522_v29  ;;  %v5909_v26 = vld [vmem:[#allocation30_spill] sm:$0xff]  ;;  %v5910_v43 = vld [vmem:[#allocation27_spill] sm:$0xff] }
 0x15e   : > { %3818 = vmatpush1.bf16.msra.mxu1 %v3817_v54  ;;  %3877 = vmatprep.subr.msk.bf16.mxu0 %vm4773_vm4, %v5896_v59  ;;  %v3884_v54 = vpack.c.bf16 %v1526_v55, %v1523_v37  ;;  %v5119_v37 = vld [vmem:[%s4453_s28 + $0x60] sm:$0xff]  ;;  %v5122_v55 = vld [vmem:[%s4453_s28 + $0x78] sm:$0xff] }
 0x15f   : > { %3844 = vmatprep.subr.msk.bf16.mxu1 %vm4624_vm8, %v5896_v59  ;;  %v3908_v35 = vpack.c.bf16 %v1527_v21, %v1524_v1  ;;  %v3886_v17 = vpack.c.bf16 %v1525_v9, %v1522_v15  ;;  %v5912_v15 = vld [vmem:[#allocation31_spill] sm:$0xff] }
 0x160   : > { %3579 = vmatmul.mubr.msk.f32.vlgmr.msra.gmra.mrb[8].mxu0 %vm5897_vm14, %v4574_v14  ;;  %vm5901_vm14 = vnez %v5840_v44  ;;  %v1534_v9 = vmul.f32 %v5119_v37, %v5912_v15  ;;  %v5921_v15 = vld [vmem:[#allocation37_spill] sm:$0xff] }
 0x161   : > { %3012 = vmatmul.mubr.msk.f32.vlgmr.msra.gmra.mrb[4].mxu1 %vm5898_vm3, %v4548_v50  ;;  %3879 = vmatpush3.bf16.msk.msra.mxu0 %vm4773_vm4, %v5896_v59  ;;  %vm5902_vm3 = vnez %v5842_v47 }
 0x162   : > { %1212 = vmatprep.mubr.f32.mxu1 %v5889_v49  ;;  %3847 = vmatpush3.bf16.msk.msra.mxu1 %vm4650_vm1, %v4567_v0 }
 0x163   : > { %3849 = vmatprep.subr.msk.bf16.mxu1 %vm4661_vm2, %v5896_v59  ;;  %3881 = vmatprep.subr.msk.bf16.mxu0 %vm4806_vm10, %v5896_v59 }
 0x165   : > { %3013 = vmatmul.mubr.msk.f32.gmra.mrb[6].mxu1 %vm5899_vm5, %v4574_v14  ;;  %3883 = vmatpush3.bf16.msk.msra.mxu0 %vm4806_vm10, %v5896_v59  ;;  %vm5903_vm5 = vnez %v5844_v8 }
 0x166   : > { %3851 = vmatpush3.bf16.msk.msra.mxu1 %vm4685_vm7, %v5896_v59  ;;  %3589 = vmatprep.subr.msk.mxu0 %vm4850_vm9, %v5900_v4  ;;  %vm5904_vm7 = vnez %v5846_v7 }
 0x167   : > { %3853 = vmatprep.subr.msk.bf16.mxu1 %vm4695_vm15, %v5896_v59  ;;  %vm5905_vm15 = vnez %v5850_v5 }
 0x169   : > { %3590 = vmatpush3.msk.msra.mxu0 %vm4850_vm9, %v5900_v4  ;;  %vm5906_vm9 = vnez %v5852_v40 }
 0x16a   : > { %3855 = vmatpush3.bf16.msk.msra.mxu1 %vm5901_vm14, %v5896_v59  ;;  %3885 = vmatprep.subr.bf16.mxu0 %v3884_v54  ;;  %v5129_v54 = vld [vmem:[%s4453_s28 + $0x98] sm:$0xff] }
 0x16b   : > { %3857 = vmatprep.subr.msk.bf16.mxu1 %vm5902_vm3, %v5896_v59 }
 0x16e   : > { %3859 = vmatpush3.bf16.msk.msra.mxu1 %vm5903_vm5, %v5896_v59 }
 0x16f   : > { %3861 = vmatprep.subr.msk.bf16.mxu1 %vm5904_vm7, %v5896_v59 }
 0x172   : > { %3863 = vmatpush3.bf16.msk.msra.mxu1 %vm5905_vm15, %v5896_v59 }
 0x173   : > { %3865 = vmatprep.subr.msk.bf16.mxu1 %vm5906_vm9, %v5896_v59 }
 0x176   : > { %3867 = vmatpush3.bf16.msk.msra.mxu1 %vm4797_vm6, %v5896_v59 }
 0x177   : > { %3869 = vmatprep.subr.msk.bf16.mxu1 %vm4801_vm11, %v5896_v59 }
 0x17a   : > { %3871 = vmatpush3.bf16.msk.msra.mxu1 %vm4822_vm12, %v5896_v59 }
 0x17b   : > { %3873 = vmatprep.subr.msk.bf16.mxu1 %vm4834_vm0, %v5896_v59 }
 0x17e   : > { %3875 = vmatpush3.bf16.msk.msra.mxu1 %vm4841_vm13, %v5896_v59  ;;  %vm5926_vm13 = vcmask 785408  }
 0x17f   : > { %3909 = vmatprep.subr.bf16.mxu1 %v3908_v35  ;;  %vm5927_vm0 = vmmov %vm5926_vm13 }
 0x21b   : > { %v3268_v56 = vpop.f32.mrb[4].mxu0  ;;  %v3553_v27 = vpop.f32.mrb[2].mxu1 }
 0x21c   : > { %v3269_v18 = vpop.f32.mrb[5].mxu0  ;;  %v1091_v11 = vpop.f32.mrb[3].mxu1 }
 0x21d   : > { %v3270_v46 = vadd.f32 %v3269_v18, %v3268_v56  ;;  %v1530_v18 = vmul.f32 %v4883_v20, %v4512_v24  ;;  %v5105_v56 = vld [vmem:[%s4453_s28 + $0x70] sm:$0xff] }
 0x21f   : > { %v5088_v41 = vadd.f32 %v3270_v46, %v1091_v11  ;;  %v3271_v12 = vpop.f32.mrb[6].mxu0  ;;  %v1532_v46 = vmul.f32 %v4892_v38, %v4509_v23  ;;  %v1531_v23 = vmul.f32 %v4904_v31, %v4525_v30  ;;  %v1536_v30 = vmul.f32 %v5105_v56, %v5910_v43  ;;  %v5911_v31 = vld [vmem:[#allocation28_spill] sm:$0xff]  ;;  %v5132_v11 = vld [vmem:[%s4453_s28 + $0xb0] sm:$0xff] }
 0x220   : > { %v3272_v32 = vpop.f32.mrb[7].mxu0  ;;  %v1539_v21 = vmul.f32 %v5108_v16, %v5911_v31  ;;  %v5166_v43 = vld [vmem:[%s4453_s28 + $0xd0] sm:$0xff]  ;;  %v5169_v31 = vld [vmem:[%s4453_s28 + $0xe8] sm:$0xff] }
 0x221   : > { %v3273_v40 = vadd.f32 %v3272_v32, %v3271_v12  ;;  %v3888_v51 = vpack.c.bf16 %v1532_v46, %v1529_v10  ;;  %v5138_v12 = vld [vmem:[%s4453_s28 + $0xb8] sm:$0xff]  ;;  %v3890_v32 = vpack.c.bf16 %v1531_v23, %v1528_v22  ;;  %v5913_v10 = vld [vmem:[#allocation32_spill] sm:$0xff]  ;;  %v5149_v22 = vld [vmem:[%s4453_s28 + $0x90] sm:$0xff]  ;;  %5920 = vst [vmem:[#allocation30_spill] sm:$0xff] %v5169_v31 }
 0x222   : > { %v1537_v46 = vmul.f32 %v5122_v55, %v5913_v10  ;;  %v5152_v23 = vld [vmem:[%s4453_s28 + $0xa8] sm:$0xff] }
 0x223   : > { %v5090_v13 = vadd.f32 %v3553_v27, %v3273_v40  ;;  %v1533_v40 = vmul.f32 %v4886_v25, %v4519_v28  ;;  %v5907_v28 = vld [vmem:[#allocation29_spill] sm:$0xff]  ;;  %v1543_v10 = vmul.f32 %v5152_v23, %v5921_v15  ;;  %v5925_v15 = vld [vmem:[#allocation39_spill] sm:$0xff] }
 0x224   : > { %v1535_v20 = vmul.f32 %v5907_v28, %v4532_v36  ;;  %v5908_v25 = vld [vmem:[#allocation17_spill] sm:$0xff]  ;;  %v5135_v36 = vld [vmem:[%s4453_s28 + $0xa0] sm:$0xff] }
 0x225   : > { %v1538_v38 = vmul.f32 %v5909_v26, %v5908_v25  ;;  %v3912_v29 = vpack.c.bf16 %v1533_v40, %v1530_v18  ;;  %v3916_v25 = vpack.c.bf16 %v1539_v21, %v1536_v30  ;;  %v5916_v26 = vld [vmem:[#allocation33_spill] sm:$0xff]  ;;  %v3894_v30 = vpack.c.bf16 %v1537_v46, %v1534_v9  ;;  %v5183_v9 = vld [vmem:[%s4453_s28 + $0xd8] sm:$0xff] }
 0x226   : > { %v1540_v21 = vmul.f32 %v5149_v22, %v4950_v60  ;;  %v5924_v46 = vld [vmem:[#allocation38_spill] sm:$0xff] }
 0x227   : > { %v3892_v40 = vpack.c.bf16 %v1538_v38, %v1535_v20  ;;  %v5159_v20 = vld [vmem:[%s4453_s28 + $0xc8] sm:$0xff]  ;;  %v5162_v38 = vld [vmem:[%s4453_s28 + $0xe0] sm:$0xff] }
 0x228   : > { %5918 = vst [vmem:[#allocation29_spill] sm:$0xff] %v5159_v20  ;;  %5919 = vst [vmem:[#allocation17_spill] sm:$0xff] %v5162_v38 }
 0x233   : > { %v3580_v27 = vpop.f32.mrb[8].mxu0 }
 0x234   : > { %v1208_v53 = vpop.f32.mrb[4].mxu1  ;;  %v1285_v24 = vpop.f32.mrb[9].mxu0 }
 0x235   : > { %v1210_v1 = vpop.f32.mrb[5].mxu1  ;;  %3591 = vmatprep.mubr.f32.mxu0 %v1285_v24 }
 0x236   : > { %1358 = vmatprep.mubr.f32.mxu1 %v1210_v1  ;;  %3592 = vmatmul.mubr.f32.vlgmr.msra.gmra.mrb[10].mxu0 %v3580_v27  ;;  %v5914_v27 = vld [vmem:[#allocation35_spill] sm:$0xff]  ;;  %v5917_v1 = vld [vmem:[#allocation34_spill] sm:$0xff] }
 0x237   : > { %1359 = vmatmul.mubr.f32.vlgmr.msra.gmra.mrb[8].mxu1 %v1208_v53  ;;  %3887 = vmatpush1.bf16.msra.mxu0 %v3886_v17  ;;  %v1541_v24 = vmul.f32 %v5129_v54, %v5914_v27  ;;  %v5915_v53 = vld [vmem:[#allocation36_spill] sm:$0xff] }
 0x238   : > { %3911 = vmatpush3.bf16.msra.mxu1 %v3908_v35  ;;  %v1214_v18 = vpop.f32.mrb[6].mxu1  ;;  %3889 = vmatprep.subr.bf16.mxu0 %v3888_v51  ;;  %v1544_v17 = vmul.f32 %v5132_v11, %v5915_v53  ;;  %v1542_v35 = vmul.f32 %v5135_v36, %v5916_v26  ;;  %v1545_v51 = vmul.f32 %v5138_v12, %v5917_v1  ;;  %v5922_v53 = vld [vmem:[#allocation40_spill] sm:$0xff]  ;;  %v5923_v26 = vld [vmem:[#allocation41_spill] sm:$0xff] }
 0x239   : > { %v1216_v28 = vpop.f32.mrb[7].mxu1  ;;  %3913 = vmatprep.subr.bf16.mxu1 %v3912_v29  ;;  %1622 = vmatprep.mubr.f32.mxu0 %v5889_v49  ;;  %v1548_v1 = vmul.f32 %v5166_v43, %v5924_v46 }
 0x23a   : > { %1363 = vmatprep.mubr.f32.mxu1 %v1216_v28  ;;  %v3896_v27 = vpack.c.bf16 %v1544_v17, %v1541_v24  ;;  %v1547_v28 = vmul.f32 %v5159_v20, %v5922_v53  ;;  %v3920_v60 = vpack.c.bf16 %v1545_v51, %v1542_v35  ;;  %v5193_v24 = vld [vmem:[%s4453_s28 + $0x110] sm:$0xff]  ;;  %v5198_v17 = vld [vmem:[%s4453_s28 + $0x100] sm:$0xff]  ;;  %v5201_v53 = vld [vmem:[%s4453_s28 + $0x118] sm:$0xff]  ;;  %v3898_v35 = vpack.c.bf16 %v1543_v10, %v1540_v21 }
 0x23b   : > { %1364 = vmatmul.mubr.f32.gmra.mrb[10].mxu1 %v1214_v18  ;;  %3891 = vmatpush1.bf16.msra.mxu0 %v3890_v32  ;;  %v1550_v18 = vmul.f32 %v5162_v38, %v5923_v26  ;;  %v5180_v32 = vld [vmem:[%s4453_s28 + $0xc0] sm:$0xff]  ;;  %v1549_v26 = vmul.f32 %v5183_v9, %v4979_v45  ;;  %v1556_v38 = vmul.f32 %v5193_v24, %v4991_v63  ;;  %v5212_v20 = vld [vmem:[%s4453_s28 + $0xf0] sm:$0xff] }
 0x23c   : > { %3915 = vmatpush3.bf16.msra.mxu1 %v3912_v29  ;;  %3893 = vmatprep.subr.bf16.mxu0 %v3892_v40  ;;  %v1551_v29 = vmul.f32 %v5169_v31, %v5925_v15  ;;  %v5190_v40 = vld [vmem:[%s4453_s28 + $0xf8] sm:$0xff]  ;;  %v1546_v51 = vmul.f32 %v5180_v32, %v4974_v48  ;;  %v5215_v31 = vld [vmem:[%s4453_s28 + $0x108] sm:$0xff]  ;;  %v1554_v48 = vmul.f32 %v5198_v17, %v4982_v2 }
 0x23d   : > { %3917 = vmatprep.subr.bf16.mxu1 %v3916_v25  ;;  %3618 = vmatprep.mubr.msk.f32.mxu1 %vm5926_vm13, %v4548_v50  ;;  %v3900_v46 = vpack.c.bf16 %v1550_v18, %v1547_v28  ;;  %v1553_v15 = vmul.f32 %v5190_v40, %v4988_v42  ;;  %v1557_v45 = vmul.f32 %v5201_v53, %v4985_v61  ;;  %v5932_v2 = vld [vmem:[#allocation20_spill] sm:$0xff]  ;;  %v5934_v61 = vld [vmem:[#allocation23_spill] sm:$0xff]  ;;  %v5937_v28 = vld [vmem:[#allocation25_spill] sm:$0xff] }
 0x23e   : > { %v1552_v42 = vmul.f32 %v5212_v20, %v5000_v3  ;;  %v1555_v63 = vmul.f32 %v5215_v31, %v5003_v52  ;;  %v5931_v3 = vld [vmem:[#allocation18_spill] sm:$0xff]  ;;  %v5933_v52 = vld [vmem:[#allocation21_spill] sm:$0xff]  ;;  %v1875_v18 = vld [vmem:[%s4453_s28 + $0x8] sm:$0xff] }
 0x23f   : > { %3895 = vmatpush1.bf16.msra.mxu0 %v3894_v30  ;;  %v3924_v30 = vpack.c.bf16 %v1551_v29, %v1548_v1  ;;  %v3904_v21 = vpack.c.bf16 %v1556_v38, %v1553_v15  ;;  %v3928_v10 = vpack.c.bf16 %v1557_v45, %v1554_v48  ;;  %v5935_v38 = vld [vmem:[#allocation24_spill] sm:$0xff]  ;;  %v1911_v1 = vmul.f32 %v1875_v18, %v1875_v18 }
 0x240   : > { %3919 = vmatpush3.bf16.msra.mxu1 %v3916_v25  ;;  %3897 = vmatprep.subr.bf16.mxu0 %v3896_v27  ;;  %v3902_v25 = vpack.c.bf16 %v1549_v26, %v1546_v51  ;;  %v3906_v27 = vpack.c.bf16 %v1555_v63, %v1552_v42  ;;  %v1876_v51 = vld [vmem:[%s4453_s28 + $0x10] sm:$0xff]  ;;  %v1879_v26 = vld [vmem:[%s4453_s28 + $0x28] sm:$0xff] }
 0x241   : > { %3921 = vmatprep.subr.bf16.mxu1 %v3920_v60  ;;  %v1915_v15 = vmul.f32 %v1879_v26, %v1879_v26  ;;  %v5939_v48 = vld [vmem:[#allocation16_spill] sm:$0xff] }
 0x243   : > { %3899 = vmatpush1.bf16.msra.mxu0 %v3898_v35 }
 0x244   : > { %3923 = vmatpush3.bf16.msra.mxu1 %v3920_v60  ;;  %3901 = vmatprep.subr.bf16.mxu0 %v3900_v46  ;;  %v1878_v60 = vld [vmem:[%s4453_s28 + $0x20] sm:$0xff]  ;;  %v1912_v46 = vmul.f32 %v1876_v51, %v1876_v51  ;;  %v1100_v51 = vmul.f32 0.0625, %v5088_v41 }
 0x245   : > { %3925 = vmatprep.subr.bf16.mxu1 %v3924_v30  ;;  %v1914_v29 = vmul.f32 %v1878_v60, %v1878_v60 }
 0x247   : > { %3903 = vmatpush1.bf16.msra.mxu0 %v3902_v25  ;;  %v3973_v35 = vpack.c.bf16 %v1914_v29, %v1911_v1  ;;  %v5940_v29 = vld [vmem:[#allocation15_spill] sm:$0xff] }
 0x248   : > { %3927 = vmatpush3.bf16.msra.mxu1 %v3924_v30  ;;  %3905 = vmatprep.subr.bf16.mxu0 %v3904_v21  ;;  %v5302_v30 = vpack.c.bf16 %v1915_v15, %v1912_v46 }
 0x249   : > { %3929 = vmatprep.subr.bf16.mxu1 %v3928_v10 }
 0x24b   : > { %3907 = vmatpush1.bf16.msra.mxu0 %v3906_v27 }
 0x24c   : > { %3931 = vmatpush3.bf16.msra.mxu1 %v3928_v10  ;;  %3933 = vmatprep.subr.msk.bf16.mxu0 %vm4624_vm8, %v5896_v59 }
 0x24d   : > { %3966 = vmatprep.subr.msk.bf16.mxu1 %vm4773_vm4, %v5896_v59 }
 0x24e   : > { %3052 = vmatmul.mubr.msk.f32.vlgmr.msra.gmra.mrb[12].mxu0 %vm5926_vm13, %v4548_v50  ;;  %vm5928_vm13 = vnez %v5836_v19 }
 0x24f   : > { %3619 = vmatmul.mubr.msk.f32.vlgmr.msra.gmra.mrb[12].mxu1 %vm5927_vm0, %v4574_v14  ;;  %1628 = vmatprep.mubr.f32.mxu0 %v5889_v49 }
 0x250   : > { %3936 = vmatpush3.bf16.msk.msra.mxu0 %vm4650_vm1, %v4567_v0  ;;  %3968 = vmatpush3.bf16.msk.msra.mxu1 %vm4773_vm4, %v5896_v59  ;;  %vm5929_vm4 = vnez %v5838_v33 }
 0x251   : > { %3938 = vmatprep.subr.msk.bf16.mxu0 %vm4661_vm2, %v5896_v59  ;;  %3970 = vmatprep.subr.msk.bf16.mxu1 %vm4806_vm10, %v5896_v59  ;;  %vm5930_vm2 = vnez %v5877_v6  ;;  %v1887_v6 = vld [vmem:[%s4453_s28 + $0x68] sm:$0xff] }
 0x252   : > { %3053 = vmatmul.mubr.msk.f32.gmra.mrb[14].mxu0 %vm5927_vm0, %v4574_v14  ;;  %vm5936_vm0 = vnez %v5935_v38 }
 0x254   : > { %3940 = vmatpush3.bf16.msk.msra.mxu0 %vm5928_vm13, %v5896_v59  ;;  %3972 = vmatpush3.bf16.msk.msra.mxu1 %vm4806_vm10, %v5896_v59  ;;  %vm278_vm10 = vcmp.gt.s32.totalorder %v5939_v48, 0 }
 0x255   : > { %3942 = vmatprep.subr.msk.bf16.mxu0 %vm5929_vm4, %v5896_v59  ;;  %3629 = vmatprep.subr.msk.mxu1 %vm5930_vm2, %v5900_v4  ;;  %v279_v45 = vsel %vm278_vm10, %v5939_v48, 0 }
 0x256   : > { %v280_v25 = vsub.s32 15, %v279_v45 }
 0x258   : > { %3944 = vmatpush3.bf16.msk.msra.mxu0 %vm5901_vm14, %v5896_v59  ;;  %3630 = vmatpush3.msk.msra.mxu1 %vm5930_vm2, %v5900_v4  ;;  %vm5938_vm2 = vnez %v5937_v28  ;;  %v281_v42 = vadd.s32 1, %v280_v25  ;;  %v5342_v4 = vld [vmem:[%s4453_s28 + $0x80] sm:$0xff] }
 0x259   : > { %3946 = vmatprep.subr.msk.bf16.mxu0 %vm5902_vm3, %v5896_v59  ;;  %3974 = vmatprep.subr.bf16.mxu1 %v3973_v35 }
 0x25c   : > { %3948 = vmatpush3.bf16.msk.msra.mxu0 %vm5903_vm5, %v5896_v59 }
 0x25d   : > { %3950 = vmatprep.subr.msk.bf16.mxu0 %vm5904_vm7, %v5896_v59 }
 0x260   : > { %3952 = vmatpush3.bf16.msk.msra.mxu0 %vm5905_vm15, %v5896_v59 }
 0x261   : > { %3954 = vmatprep.subr.msk.bf16.mxu0 %vm5906_vm9, %v5896_v59 }
 0x264   : > { %3956 = vmatpush3.bf16.msk.msra.mxu0 %vm4797_vm6, %v5896_v59 }
 0x265   : > { %3958 = vmatprep.subr.msk.bf16.mxu0 %vm4801_vm11, %v5896_v59 }
 0x268   : > { %3960 = vmatpush3.bf16.msk.msra.mxu0 %vm4822_vm12, %v5896_v59 }
 0x269   : > { %3962 = vmatprep.subr.msk.bf16.mxu0 %vm5936_vm0, %v5896_v59  ;;  %vm282_vm0 = vcmp.lt.s32.totalorder %v5940_v29, 16  ;;  %v1874_v29 = vld [vmem:[%s4453_s28] sm:$0xff] }
 0x26c   : > { %3964 = vmatpush3.bf16.msk.msra.mxu0 %vm5938_vm2, %v5896_v59  ;;  %vm283_vm2 = vcmp.gt.s32.totalorder %v281_v42, 1 }
 0x26d   : > { %3998 = vmatprep.subr.bf16.mxu0 %v5302_v30  ;;  %v284_v63 = vsel %vm283_vm2, %v281_v42, 1  ;;  %vm5948_vm2 = vcmask 785408  }
 0x26e   : > { %v285_v21 = vcvt.s32.f32 %v284_v63  ;;  %v1101_v63 = vmul.f32 0.0625, %v5090_v13  ;;  %vm5952_vm10 = vmmov %vm5948_vm2 }
 0x270   : > { %4129 = vrcp.f32 %v285_v21 }
 0x27a   : > { %v4130_v1 = vpop.eup %4129 }
 0x27b   : > { %v5309_v15 = vsel %vm282_vm0, %v4130_v1, 0.0  ;;  %vm5953_vm0 = vmmov %vm5948_vm2 }
 0x27c   : > { %5941 = vst [vmem:[#allocation27_spill] sm:$0xff] %v5309_v15  ;;  %v5312_v42 = vmul.f32 %v1100_v51, %v5309_v15  ;;  %v1885_v51 = vld [vmem:[%s4453_s28 + $0x58] sm:$0xff]  ;;  %vm5955_vm12 = vmmov %vm5953_vm0 }
 0x27e   : > { %5942 = vst [vmem:[#allocation28_spill] sm:$0xff] %v5312_v42 }
 0x309   : > { %v3593_v10 = vpop.f32.mrb[10].mxu0 }
 0x30a   : > { %v3327_v27 = vpop.f32.mrb[8].mxu1  ;;  %v1435_v18 = vpop.f32.mrb[11].mxu0 }
 0x30b   : > { %v3328_v60 = vpop.f32.mrb[9].mxu1 }
 0x30c   : > { %v3329_v35 = vadd.f32 %v3328_v60, %v3327_v27  ;;  %v5323_v60 = vmul.f32 %v1101_v63, %v5309_v15  ;;  %v1883_v63 = vld [vmem:[%s4453_s28 + $0x48] sm:$0xff] }
 0x30d   : > { %v1919_v58 = vmul.f32 %v1883_v63, %v1883_v63 }
 0x30e   : > { %v1436_v26 = vadd.f32 %v3329_v35, %v1435_v18  ;;  %v3330_v46 = vpop.f32.mrb[10].mxu1  ;;  %5945 = vst [vmem:[#allocation35_spill] sm:$0xff] %v5323_v60  ;;  %v1877_v35 = vld [vmem:[%s4453_s28 + $0x18] sm:$0xff] }
 0x30f   : > { %v3331_v48 = vpop.f32.mrb[11].mxu1 }
 0x310   : > { %v1444_v45 = vmul.f32 0.0625, %v1436_v26  ;;  %v3332_v25 = vadd.f32 %v3331_v48, %v3330_v46  ;;  %v1881_v26 = vld [vmem:[%s4453_s28 + $0x38] sm:$0xff]  ;;  %v1884_v46 = vld [vmem:[%s4453_s28 + $0x50] sm:$0xff]  ;;  %v1910_v48 = vmul.f32 %v1874_v29, %v1874_v29  ;;  %v1924_v29 = vmul.f32 %v5105_v56, %v5105_v56 }
 0x311   : > { %v1925_v56 = vmul.f32 %v5122_v55, %v5122_v55  ;;  %v1932_v55 = vmul.f32 %v5132_v11, %v5132_v11  ;;  %v1936_v11 = vmul.f32 %v5166_v43, %v5166_v43 }
 0x312   : > { %v5316_v41 = vmul.f32 %v1444_v45, %v5309_v15  ;;  %v1441_v21 = vadd.f32 %v3593_v10, %v3332_v25  ;;  %v1882_v10 = vld [vmem:[%s4453_s28 + $0x40] sm:$0xff]  ;;  %v1913_v45 = vmul.f32 %v1877_v35, %v1877_v35  ;;  %v1880_v25 = vld [vmem:[%s4453_s28 + $0x30] sm:$0xff]  ;;  %v1927_v35 = vmul.f32 %v5108_v16, %v5108_v16 }
 0x314   : > { %5943 = vst [vmem:[#allocation31_spill] sm:$0xff] %v5316_v41  ;;  %v5320_v27 = vmul.f32 %v5316_v41, %v5312_v42  ;;  %v1445_v18 = vmul.f32 0.0625, %v1441_v21  ;;  %v1918_v21 = vmul.f32 %v1882_v10, %v1882_v10  ;;  %v1921_v41 = vmul.f32 %v1885_v51, %v1885_v51 }
 0x315   : > { %v1920_v42 = vmul.f32 %v1884_v46, %v1884_v46  ;;  %v1926_v46 = vmul.f32 %v5342_v4, %v5342_v4 }
 0x316   : > { %5944 = vst [vmem:[#allocation32_spill] sm:$0xff] %v5320_v27  ;;  %v5326_v1 = vmul.f32 %v1445_v18, %v5309_v15  ;;  %v1917_v18 = vmul.f32 %v1881_v26, %v1881_v26  ;;  %v3975_v15 = vpack.c.bf16 %v1913_v45, %v1910_v48  ;;  %v4001_v34 = vpack.c.bf16 %v1921_v41, %v1918_v21  ;;  %v5950_v48 = vld [vmem:[#allocation29_spill] sm:$0xff] }
 0x317   : > { %v1923_v26 = vmul.f32 %v1887_v6, %v1887_v6  ;;  %v1922_v41 = vmul.f32 %v5119_v37, %v5119_v37  ;;  %v4005_v6 = vpack.c.bf16 %v1927_v35, %v1924_v29  ;;  %v1929_v37 = vmul.f32 %v5129_v54, %v5129_v54  ;;  %v5951_v45 = vld [vmem:[#allocation17_spill] sm:$0xff] }
 0x318   : > { %5946 = vst [vmem:[#allocation36_spill] sm:$0xff] %v5326_v1  ;;  %v5330_v13 = vmul.f32 %v5326_v1, %v5323_v60  ;;  %v1916_v60 = vmul.f32 %v1880_v25, %v1880_v25  ;;  %v3977_v51 = vpack.c.bf16 %v1920_v42, %v1917_v18  ;;  %v1930_v42 = vmul.f32 %v5135_v36, %v5135_v36 }
 0x319   : > { %v1931_v36 = vmul.f32 %v5152_v23, %v5152_v23  ;;  %v1934_v21 = vmul.f32 %v5180_v32, %v5180_v32  ;;  %v1937_v18 = vmul.f32 %v5183_v9, %v5183_v9  ;;  %v1942_v29 = vmul.f32 %v5198_v17, %v5198_v17 }
 0x31a   : > { %5947 = vst [vmem:[#allocation33_spill] sm:$0xff] %v5330_v13  ;;  %v3979_v63 = vpack.c.bf16 %v1919_v58, %v1916_v60  ;;  %v3981_v58 = vpack.c.bf16 %v1926_v46, %v1923_v26  ;;  %v5949_v60 = vld [vmem:[#allocation30_spill] sm:$0xff]  ;;  %v1945_v35 = vmul.f32 %v5201_v53, %v5201_v53  ;;  %v1944_v32 = vmul.f32 %v5193_v24, %v5193_v24 }
 0x31b   : > { %v3991_v26 = vpack.c.bf16 %v1937_v18, %v1934_v21  ;;  %v1940_v9 = vmul.f32 %v5212_v20, %v5212_v20  ;;  %v1943_v17 = vmul.f32 %v5215_v31, %v5215_v31  ;;  %v5959_v20 = vld [vmem:[#allocation19_spill] sm:$0xff]  ;;  %v4275_v31 = vmov 0.0|0.0   ;;  %v5964_v21 = vld [vmem:[#allocation22_spill] sm:$0xff] }
 0x31c   : > { %v4017_v46 = vpack.c.bf16 %v1945_v35, %v1942_v29  ;;  %v5966_v18 = vmov 1.0   ;;  %v5484_v29 = vpack.c.bf16 %v4574_v14, %v4548_v50 }
 0x321   : > { %v1624_v1 = vpop.f32.mrb[12].mxu0 }
 0x322   : > { %v3620_v13 = vpop.f32.mrb[12].mxu1  ;;  %v1626_v27 = vpop.f32.mrb[13].mxu0 }
 0x323   : > { %v1701_v10 = vpop.f32.mrb[13].mxu1  ;;  %1774 = vmatprep.mubr.f32.mxu0 %v1626_v27  ;;  %v1933_v27 = vmul.f32 %v5138_v12, %v5138_v12 }
 0x324   : > { %3631 = vmatprep.mubr.f32.mxu1 %v1701_v10  ;;  %1775 = vmatmul.mubr.f32.vlgmr.msra.gmra.mrb[16].mxu0 %v1624_v1  ;;  %v1939_v1 = vmul.f32 %v5949_v60, %v5949_v60  ;;  %v5963_v60 = vld [vmem:[#allocation33_spill] sm:$0xff] }
 0x325   : > { %3632 = vmatmul.mubr.f32.vlgmr.msra.gmra.mrb[14].mxu1 %v3620_v13  ;;  %v1630_v25 = vpop.f32.mrb[14].mxu0  ;;  %4000 = vmatpush3.bf16.msra.mxu0 %v5302_v30  ;;  %v3983_v30 = vpack.c.bf16 %v1925_v56, %v1922_v41  ;;  %v4009_v12 = vpack.c.bf16 %v1933_v27, %v1930_v42  ;;  %v3985_v13 = vpack.c.bf16 %v1932_v55, %v1929_v37  ;;  %v5961_v37 = vld [vmem:[#allocation27_spill] sm:$0xff] }
 0x326   : > { %3976 = vmatpush1.bf16.msra.mxu1 %v3975_v15  ;;  %v1632_v16 = vpop.f32.mrb[15].mxu0  ;;  %4002 = vmatprep.subr.bf16.mxu0 %v4001_v34  ;;  %v1928_v15 = vmul.f32 %v5149_v22, %v5149_v22  ;;  %v1935_v22 = vmul.f32 %v5950_v48, %v5950_v48  ;;  %v4013_v43 = vpack.c.bf16 %v1939_v1, %v1936_v11 }
 0x327   : > { %1779 = vmatprep.mubr.f32.mxu0 %v1632_v16  ;;  %3978 = vmatprep.subr.bf16.mxu1 %v3977_v51  ;;  %v1941_v51 = vmul.f32 %v5190_v40, %v5190_v40 }
 0x328   : > { %1780 = vmatmul.mubr.f32.gmra.mrb[18].mxu0 %v1630_v25  ;;  %2010 = vmatprep.mubr.f32.mxu1 %v5889_v49  ;;  %v3987_v23 = vpack.c.bf16 %v1931_v36, %v1928_v15  ;;  %v3995_v25 = vpack.c.bf16 %v1943_v17, %v1940_v9  ;;  %v5962_v15 = vld [vmem:[#allocation32_spill] sm:$0xff] }
 0x329   : > { %4004 = vmatpush3.bf16.msra.mxu0 %v4001_v34  ;;  %3658 = vmatprep.mubr.msk.f32.mxu0 %vm5948_vm2, %v4548_v50  ;;  %v1938_v34 = vmul.f32 %v5951_v45, %v5951_v45  ;;  %v3993_v53 = vpack.c.bf16 %v1944_v32, %v1941_v51  ;;  %vm5954_vm2 = vnez %v5834_v62 }
 0x32a   : > { %3980 = vmatpush1.bf16.msra.mxu1 %v3979_v63  ;;  %4006 = vmatprep.subr.bf16.mxu0 %v4005_v6 }
 0x32b   : > { %3982 = vmatprep.subr.bf16.mxu1 %v3981_v58  ;;  %v3989_v10 = vpack.c.bf16 %v1938_v34, %v1935_v22 }
 0x32d   : > { %4008 = vmatpush3.bf16.msra.mxu0 %v4005_v6 }
 0x32e   : > { %3984 = vmatpush1.bf16.msra.mxu1 %v3983_v30  ;;  %4010 = vmatprep.subr.bf16.mxu0 %v4009_v12 }
 0x32f   : > { %3986 = vmatprep.subr.bf16.mxu1 %v3985_v13 }
 0x331   : > { %4012 = vmatpush3.bf16.msra.mxu0 %v4009_v12 }
 0x332   : > { %3988 = vmatpush1.bf16.msra.mxu1 %v3987_v23  ;;  %4014 = vmatprep.subr.bf16.mxu0 %v4013_v43 }
 0x333   : > { %3990 = vmatprep.subr.bf16.mxu1 %v3989_v10 }
 0x335   : > { %4016 = vmatpush3.bf16.msra.mxu0 %v4013_v43  ;;  %v5967_v43 = vld [vmem:[#allocation26_spill] sm:$0xff] }
 0x336   : > { %3992 = vmatpush1.bf16.msra.mxu1 %v3991_v26  ;;  %4018 = vmatprep.subr.bf16.mxu0 %v4017_v46 }
 0x337   : > { %3994 = vmatprep.subr.bf16.mxu1 %v3993_v53 }
 0x339   : > { %4020 = vmatpush3.bf16.msra.mxu0 %v4017_v46 }
 0x33a   : > { %3996 = vmatpush1.bf16.msra.mxu1 %v3995_v25  ;;  %2333 = vmatprep.subr.bf16.mxu0 %v4275_v31 }
 0x33b   : > { %4022 = vmatprep.subr.msk.bf16.mxu1 %vm4624_vm8, %v5896_v59 }
 0x33c   : > { %3659 = vmatmul.mubr.msk.f32.vlgmr.msra.gmra.mrb[20].mxu0 %vm5952_vm10, %v4574_v14  ;;  %vm5957_vm10 = vnez %v5935_v38 }
 0x33d   : > { %3092 = vmatmul.mubr.msk.f32.vlgmr.msra.gmra.mrb[16].mxu1 %vm5953_vm0, %v4548_v50  ;;  %vm5958_vm0 = vnez %v5937_v28  ;;  %2334 = vmatpush1.bf16.msra.mxu0 %v4275_v31  ;;  %v4277_v50 = vmov 0  }
 0x33e   : > { %2016 = vmatprep.mubr.f32.mxu1 %v5889_v49  ;;  %4025 = vmatpush3.bf16.msk.msra.mxu1 %vm4650_vm1, %v4567_v0 }
 0x33f   : > { %4027 = vmatprep.subr.msk.bf16.mxu1 %vm5954_vm2, %v5896_v59  ;;  %2335 = vmatprep.subr.bf16.mxu0 %v4275_v31 }
 0x340   : > { %2365 = vmatprep.mubr.bf16.mxu0 %v4277_v50 }
 0x341   : > { %3093 = vmatmul.mubr.msk.f32.gmra.mrb[18].mxu1 %vm5955_vm12, %v4574_v14  ;;  %vm5956_vm12 = vnez %v5934_v61  ;;  %2336 = vmatpush1.bf16.msra.mxu0 %v4275_v31 }
 0x342   : > { %4029 = vmatpush3.bf16.msk.msra.mxu1 %vm5928_vm13, %v5896_v59 }
 0x343   : > { %4031 = vmatprep.subr.msk.bf16.mxu1 %vm5929_vm4, %v5896_v59 }
 0x346   : > { %4033 = vmatpush3.bf16.msk.msra.mxu1 %vm5901_vm14, %v5896_v59 }
 0x347   : > { %4035 = vmatprep.subr.msk.bf16.mxu1 %vm5902_vm3, %v5896_v59 }
 0x34a   : > { %4037 = vmatpush3.bf16.msk.msra.mxu1 %vm5903_vm5, %v5896_v59 }
 0x34b   : > { %4039 = vmatprep.subr.msk.bf16.mxu1 %vm5904_vm7, %v5896_v59 }
 0x34e   : > { %4041 = vmatpush3.bf16.msk.msra.mxu1 %vm5905_vm15, %v5896_v59 }
 0x34f   : > { %4043 = vmatprep.subr.msk.bf16.mxu1 %vm5906_vm9, %v5896_v59  ;;  %vm5960_vm9 = vnez %v5959_v20 }
 0x352   : > { %4045 = vmatpush3.bf16.msk.msra.mxu1 %vm4797_vm6, %v5896_v59 }
 0x353   : > { %4047 = vmatprep.subr.msk.bf16.mxu1 %vm4801_vm11, %v5896_v59 }
 0x356   : > { %4049 = vmatpush3.bf16.msk.msra.mxu1 %vm5956_vm12, %v5896_v59 }
 0x357   : > { %4051 = vmatprep.subr.msk.bf16.mxu1 %vm5957_vm10, %v5896_v59  ;;  %vm5968_vm10 = vnez %v5967_v43 }
 0x35a   : > { %4053 = vmatpush3.bf16.msk.msra.mxu1 %vm5958_vm0, %v5896_v59  ;;  %vm5965_vm0 = vnez %v5964_v21 }
 0x35b   : > { %4055 = vmatprep.subr.msk.bf16.mxu1 %vm5960_vm9, %v5896_v59 }
 0x3f7   : > { %v3386_v40 = vpop.f32.mrb[16].mxu0 }
 0x3f8   : > { %v3633_v24 = vpop.f32.mrb[14].mxu1  ;;  %v3387_v63 = vpop.f32.mrb[17].mxu0 }
 0x3f9   : > { %v3388_v41 = vadd.f32 %v3387_v63, %v3386_v40  ;;  %v1851_v56 = vpop.f32.mrb[15].mxu1 }
 0x3fb   : > { %v1852_v16 = vadd.f32 %v3388_v41, %v1851_v56  ;;  %v3389_v6 = vpop.f32.mrb[18].mxu0  ;;  %v5973_v41 = vld [vmem:[#allocation35_spill] sm:$0xff] }
 0x3fc   : > { %v3390_v42 = vpop.f32.mrb[19].mxu0  ;;  %v2259_v56 = vmul.f32 %v5973_v41, %v5973_v41 }
 0x3fd   : > { %v1860_v27 = vmul.f32 0.0625, %v1852_v16  ;;  %v3391_v58 = vadd.f32 %v3390_v42, %v3389_v6  ;;  %v5974_v42 = vld [vmem:[#allocation28_spill] sm:$0xff] }
 0x3ff   : > { %v5457_v55 = vmul.f32 %v1860_v27, %v5961_v37  ;;  %v1857_v30 = vadd.f32 %v3633_v24, %v3391_v58  ;;  %v2258_v27 = vmul.f32 %v5974_v42, %v5974_v42 }
 0x401   : > { %v1870_v36 = vsub.f32 %v5457_v55, %v5962_v15  ;;  %v1861_v12 = vmul.f32 0.0625, %v1857_v30  ;;  %v3172_v55 = vpack.c.bf16 %v5889_v49, %v5966_v18 }
 0x403   : > { %v5462_v11 = vmul.f32 %v1861_v12, %v5961_v37 }
 0x405   : > { %v1871_v1 = vsub.f32 %v5462_v11, %v5963_v60 }
 0x40f   : > { %v3660_v13 = vpop.f32.mrb[20].mxu0 }
 0x410   : > { %v2012_v48 = vpop.f32.mrb[16].mxu1  ;;  %v2089_v22 = vpop.f32.mrb[21].mxu0 }
 0x411   : > { %v2014_v45 = vpop.f32.mrb[17].mxu1 }
 0x412   : > { %2162 = vmatprep.mubr.f32.mxu1 %v2014_v45 }
 0x413   : > { %2163 = vmatmul.mubr.f32.vlgmr.msra.gmra.mrb[20].mxu1 %v2012_v48 }
 0x414   : > { %4057 = vmatpush3.bf16.msk.msra.mxu1 %vm5960_vm9, %v5896_v59  ;;  %v2018_v34 = vpop.f32.mrb[18].mxu1  ;;  %vm5814_vm9 = vmmov 0  }
 0x415   : > { %v2020_v23 = vpop.f32.mrb[19].mxu1  ;;  %4059 = vmatprep.subr.msk.bf16.mxu1 %vm5965_vm0, %v5896_v59 }
 0x416   : > { %2167 = vmatprep.mubr.f32.mxu1 %v2020_v23 }
 0x417   : > { %2168 = vmatmul.mubr.f32.gmra.mrb[22].mxu1 %v2018_v34 }
 0x418   : > { %4061 = vmatpush3.bf16.msk.msra.mxu1 %vm5965_vm0, %v5896_v59  ;;  %3671 = vmatprep.mubr.f32.mxu1 %v2089_v22  ;;  %vm5969_vm0 = vcmask 785408  }
 0x419   : > { %3669 = vmatprep.subr.msk.mxu1 %vm5968_vm10, %v5966_v18 }
 0x41c   : > { %3670 = vmatpush3.msk.msra.mxu1 %vm5968_vm10, %v5966_v18 }
 0x41d   : > { %3672 = vmatmul.mubr.f32.vlgmr.msra.gmra.mrb[24].mxu1 %v3660_v13  ;;  %3674 = vmatprep.subr.bf16.mxu1 %v5889_v49 }
 0x41e   : > { %3675 = vmatpush3.bf16.msra.mxu1 %v4275_v31  ;;  %3676 = vmatprep.mubr.msk.bf16.mxu1 %vm5814_vm9, %v5889_v49  ;;  %vm5971_vm9 = vnez %v5935_v38 }
 0x41f   : > { %3460 = vmatprep.subr.msk.bf16.mxu1 %vm4624_vm8, %v5896_v59 }
 0x421   : > { %3677 = vmatmul.mubr.msk.bf16.vlgmr.msra.gmra.mrb[28].mxu1 %vm5969_vm0, %v5484_v29  ;;  %vm5970_vm0 = vnez %v5931_v3 }
 0x422   : > { %3461 = vmatpush3.bf16.msk.msra.mxu1 %vm4650_vm1, %v4567_v0 }
 0x423   : > { %3462 = vmatprep.subr.msk.bf16.mxu1 %vm5954_vm2, %v5896_v59 }
 0x426   : > { %3463 = vmatpush3.bf16.msk.msra.mxu1 %vm5928_vm13, %v5896_v59 }
 0x427   : > { %3464 = vmatprep.subr.msk.bf16.mxu1 %vm5929_vm4, %v5896_v59 }
 0x42a   : > { %3465 = vmatpush3.bf16.msk.msra.mxu1 %vm5901_vm14, %v5896_v59 }
 0x42b   : > { %3466 = vmatprep.subr.msk.bf16.mxu1 %vm5902_vm3, %v5896_v59 }
 0x42e   : > { %3467 = vmatpush3.bf16.msk.msra.mxu1 %vm5903_vm5, %v5896_v59 }
 0x42f   : > { %3468 = vmatprep.subr.msk.bf16.mxu1 %vm5904_vm7, %v5896_v59 }
 0x432   : > { %3469 = vmatpush3.bf16.msk.msra.mxu1 %vm5905_vm15, %v5896_v59  ;;  %vm5972_vm15 = vnez %v5937_v28 }
 0x433   : > { %3470 = vmatprep.subr.msk.bf16.mxu1 %vm5970_vm0, %v5896_v59 }
 0x436   : > { %3471 = vmatpush3.bf16.msk.msra.mxu1 %vm4797_vm6, %v5896_v59 }
 0x437   : > { %3472 = vmatprep.subr.msk.bf16.mxu1 %vm4801_vm11, %v5896_v59  ;;  %vm5980_vm11 = vnez %v5964_v21 }
 0x43a   : > { %3473 = vmatpush3.bf16.msk.msra.mxu1 %vm5956_vm12, %v5896_v59  ;;  %vm5979_vm12 = vmmov 0  }
 0x43b   : > { %3474 = vmatprep.subr.msk.bf16.mxu1 %vm5971_vm9, %v5896_v59  ;;  %vm5978_vm9 = vnez %v5959_v20 }
 0x43e   : > { %3475 = vmatpush3.bf16.msk.msra.mxu1 %vm5972_vm15, %v5896_v59  ;;  %vm5977_vm15 = vcmask 785408  }
 0x43f   : > { %3690 = vmatprep.subr.bf16.mxu1 %v5889_v49 }
 0x4e6   : > { %v3445_v14 = vpop.f32.mrb[20].mxu1 }
 0x4e7   : > { %v3446_v35 = vpop.f32.mrb[21].mxu1 }
 0x4e8   : > { %v3447_v10 = vadd.f32 %v3446_v35, %v3445_v14 }
 0x4ea   : > { %v3448_v51 = vpop.f32.mrb[22].mxu1 }
 0x4eb   : > { %v3449_v32 = vpop.f32.mrb[23].mxu1 }
 0x4ec   : > { %v3450_v26 = vadd.f32 %v3449_v32, %v3448_v51 }
 0x4f0   : > { %v3673_v9 = vpop.f32.mrb[24].mxu1 }
 0x4f1   : > { %v2245_v17 = vadd.f32 %v3673_v9, %v3450_v26  ;;  %v2239_v46 = vpop.f32.mrb[25].mxu1  ;;  %v5975_v26 = vld [vmem:[#allocation36_spill] sm:$0xff] }
 0x4f2   : > { %v2240_v53 = vadd.f32 %v3447_v10, %v2239_v46  ;;  %v5976_v46 = vld [vmem:[#allocation31_spill] sm:$0xff] }
 0x4f3   : > { %v2249_v25 = vmul.f32 0.0625, %v2245_v17 }
 0x4f4   : > { %v2248_v40 = vmul.f32 0.0625, %v2240_v53  ;;  %v2410_v24 = vpop.f32.mrb[28].mxu1 }
 0x4f5   : > { %v2251_v63 = vmul.f32 %v2249_v25, %v5961_v37  ;;  %v3678_v16 = vpop.f32.mrb[29].mxu1 }
 0x4f6   : > { %v2250_v6 = vmul.f32 %v2248_v40, %v5961_v37  ;;  %v2413_v58 = vpop.f32.mrb[30].mxu1 }
 0x4f7   : > { %v2261_v30 = vsub.f32 %v2251_v63, %v2259_v56  ;;  %v2419_v12 = vpack.c.bf16 %v2413_v58, %v2410_v24  ;;  %v3679_v13 = vpop.f32.mrb[31].mxu1 }
 0x4f8   : > { %v2260_v48 = vsub.f32 %v2250_v6, %v2258_v27 }
 0x4f9   : > { %v2263_v22 = vadd.f32 0.001, %v2261_v30 }
 0x4fa   : > { %v2262_v45 = vadd.f32 0.001, %v2260_v48 }
 0x4fb   : > { %4131 = vrcp.f32 %v2263_v22 }
 0x4fc   : > { %4133 = vrcp.f32 %v2262_v45 }
 0x505   : > { %v4132_v34 = vpop.eup %4131 }
 0x506   : > { %v4134_v23 = vpop.eup %4133  ;;  %v2267_v14 = vmul.f32 %v4132_v34, %v1871_v1 }
 0x507   : > { %v2266_v35 = vmul.f32 %v4134_v23, %v1870_v36 }
 0x508   : > { %v2271_v10 = vmul.f32 %v2267_v14, %v5973_v41  ;;  %v2322_v17 = vpack.c.bf16 %v5889_v49, %v2267_v14 }
 0x509   : > { %v2319_v51 = vpack.c.bf16 %v2266_v35, %v5889_v49  ;;  %v2270_v32 = vmul.f32 %v2266_v35, %v5974_v42 }
 0x50a   : > { %v2273_v9 = vsub.f32 %v5975_v26, %v2271_v10 }
 0x50b   : > { %2337 = vmatprep.subr.bf16.mxu0 %v2319_v51  ;;  %v2272_v53 = vsub.f32 %v5976_v46, %v2270_v32 }
 0x50c   : > { %2338 = vmatpush1.bf16.msra.mxu0 %v4275_v31  ;;  %v2558_v11 = vpack.c.bf16 %v5889_v49, %v2273_v9 }
 0x50d   : > { %2339 = vmatprep.subr.bf16.mxu0 %v2322_v17  ;;  %v2555_v36 = vpack.c.bf16 %v2272_v53, %v5889_v49 }
 0x510   : > { %2340 = vmatpush1.bf16.msra.mxu0 %v4275_v31 }
 0x511   : > { %3680 = vmatprep.subr.bf16.mxu0 %v5889_v49 }
 0x513   : > { %3132 = vmatmul.mubr.msk.bf16.vlgmr.msra.gmra.mrb[24].mxu0 %vm5977_vm15, %v5484_v29  ;;  %vm5981_vm15 = vmmov 1  }
 0x514   : > { %3681 = vmatpush3.bf16.msk.msra.mxu0 %vm5978_vm9, %v5896_v59  ;;  %3686 = vmatprep.mubr.msk.bf16.mxu0 %vm5979_vm12, %v5889_v49  ;;  %vm5578_vm6 = vmpackc.low %vm5981_vm15, %vm5968_vm10  ;;  %vm5984_vm10 = vcmask 785408  }
 0x515   : > { %3682 = vmatprep.subr.bf16.mxu0 %v5889_v49 }
 0x518   : > { %3683 = vmatpush3.bf16.msk.msra.mxu0 %vm5980_vm11, %v5896_v59 }
 0x519   : > { %3684 = vmatprep.subr.bf16.mxu0 %v5889_v49 }
 0x51c   : > { %3685 = vmatpush3.bf16.msk.msra.mxu0 %vm5578_vm6, %v3172_v55 }
 0x51d   : > { %2566 = vmatprep.subr.bf16.mxu0 %v4275_v31 }
 0x51f   : > { %3687 = vmatmul.mubr.bf16.vlgmr.msra.gmra.mrb[28].mxu0 %v2419_v12 }
 0x520   : > { %2567 = vmatpush1.bf16.msra.mxu0 %v4275_v31  ;;  %2598 = vmatprep.mubr.bf16.mxu0 %v4277_v50 }
 0x521   : > { %2568 = vmatprep.subr.bf16.mxu0 %v4275_v31 }
 0x524   : > { %2569 = vmatpush1.bf16.msra.mxu0 %v4275_v31 }
 0x525   : > { %2570 = vmatprep.subr.bf16.mxu0 %v2555_v36 }
 0x528   : > { %2571 = vmatpush1.bf16.msra.mxu0 %v4275_v31 }
 0x529   : > { %2572 = vmatprep.subr.bf16.mxu0 %v2558_v11 }
 0x52c   : > { %2573 = vmatpush1.bf16.msra.mxu0 %v4275_v31 }
 0x52d   : > { %3488 = vmatprep.subr.msk.bf16.mxu0 %vm4624_vm8, %v5896_v59  ;;  %vm5985_vm8 = vnez %v5850_v5 }
 0x52f   : > { %3174 = vmatmul.mubr.msk.bf16.vlgmr.msra.gmra.mrb[32].mxu0 %vm5984_vm10, %v5484_v29 }
 0x530   : > { %3489 = vmatpush3.bf16.msk.msra.mxu0 %vm4650_vm1, %v4567_v0  ;;  %vm5986_vm1 = vnez %v5932_v2 }
 0x531   : > { %3490 = vmatprep.subr.msk.bf16.mxu0 %vm5954_vm2, %v5896_v59 }
 0x534   : > { %3491 = vmatpush3.bf16.msk.msra.mxu0 %vm5928_vm13, %v5896_v59 }
 0x535   : > { %3492 = vmatprep.subr.msk.bf16.mxu0 %vm5929_vm4, %v5896_v59  ;;  %vm5987_vm4 = vnez %v5933_v52 }
 0x538   : > { %3493 = vmatpush3.bf16.msk.msra.mxu0 %vm5901_vm14, %v5896_v59  ;;  %vm5988_vm14 = vnez %v5934_v61 }
 0x539   : > { %3494 = vmatprep.subr.msk.bf16.mxu0 %vm5902_vm3, %v5896_v59  ;;  %vm5990_vm3 = vnez %v5937_v28 }
 0x53c   : > { %3495 = vmatpush3.bf16.msk.msra.mxu0 %vm5903_vm5, %v5896_v59  ;;  %vm5991_vm5 = vmmov %vm5984_vm10 }
 0x53d   : > { %3496 = vmatprep.subr.msk.bf16.mxu0 %vm5904_vm7, %v5896_v59  ;;  %vm5989_vm7 = vnez %v5935_v38 }
 0x540   : > { %3497 = vmatpush3.bf16.msk.msra.mxu0 %vm5985_vm8, %v5896_v59 }
 0x541   : > { %3498 = vmatprep.subr.msk.bf16.mxu0 %vm5970_vm0, %v5896_v59 }
 0x544   : > { %3499 = vmatpush3.bf16.msk.msra.mxu0 %vm5986_vm1, %v5896_v59 }
 0x545   : > { %3500 = vmatprep.subr.msk.bf16.mxu0 %vm5987_vm4, %v5896_v59 }
 0x548   : > { %3501 = vmatpush3.bf16.msk.msra.mxu0 %vm5988_vm14, %v5896_v59 }
 0x549   : > { %3502 = vmatprep.subr.msk.bf16.mxu0 %vm5989_vm7, %v5896_v59 }
 0x54c   : > { %3503 = vmatpush3.bf16.msk.msra.mxu0 %vm5990_vm3, %v5896_v59 }
 0x5e6   : > { %v2367_v0 = vpop.f32.mrb[24].mxu0 }
 0x5e7   : > { %v2369_v39 = vpop.f32.mrb[25].mxu0 }
 0x5e8   : > { %v2371_v57 = vpop.f32.mrb[26].mxu0 }
 0x5e9   : > { %v2417_v62 = vpack.c.bf16 %v2371_v57, %v2367_v0  ;;  %v2373_v19 = vpop.f32.mrb[27].mxu0 }
 0x5ea   : > { %v2418_v33 = vpack.c.bf16 %v2373_v19, %v2369_v39 }
 0x5ec   : > { %2452 = vmatprep.mubr.bf16.mxu1 %v2418_v33 }
 0x5ed   : > { %2453 = vmatmul.mubr.bf16.vlgmr.msra.gmra.mrb[32].mxu1 %v2417_v62 }
 0x5ee   : > { %3691 = vmatpush3.bf16.msra.mxu1 %v4275_v31  ;;  %3692 = vmatprep.mubr.msk.bf16.mxu1 %vm5979_vm12, %v5889_v49 }
 0x5ef   : > { %3696 = vmatprep.subr.bf16.mxu1 %v5889_v49 }
 0x5f2   : > { %v2495_v44 = vpop.f32.mrb[28].mxu0 }
 0x5f3   : > { %v3688_v47 = vpop.f32.mrb[29].mxu0 }
 0x5f4   : > { %v2498_v8 = vpop.f32.mrb[30].mxu0 }
 0x5f5   : > { %3693 = vmatmul.mubr.msk.bf16.vlgmr.msra.gmra.mrb[36].mxu1 %vm5991_vm5, %v5484_v29  ;;  %v3689_v7 = vpop.f32.mrb[31].mxu0 }
 0x5f6   : > { %3697 = vmatpush3.bf16.msk.msra.mxu1 %vm5978_vm9, %v5896_v59  ;;  %3702 = vmatprep.mubr.msk.bf16.mxu1 %vm5979_vm12, %v5889_v49 }
 0x5f7   : > { %3698 = vmatprep.subr.bf16.mxu1 %v5889_v49 }
 0x5fa   : > { %3699 = vmatpush3.bf16.msk.msra.mxu1 %vm5980_vm11, %v5896_v59 }
 0x5fb   : > { %3700 = vmatprep.subr.bf16.mxu1 %v5889_v49 }
 0x5fe   : > { %3701 = vmatpush3.bf16.msk.msra.mxu1 %vm5578_vm6, %v3172_v55 }
 0x602   : > { %v2600_v5 = vpop.f32.mrb[32].mxu0 }
 0x603   : > { %v2602_v3 = vpop.f32.mrb[33].mxu0 }
 0x604   : > { %v2604_v2 = vpop.f32.mrb[34].mxu0 }
 0x605   : > { %v2650_v52 = vpack.c.bf16 %v2604_v2, %v2600_v5  ;;  %v2606_v61 = vpop.f32.mrb[35].mxu0 }
 0x606   : > { %v2651_v38 = vpack.c.bf16 %v2606_v61, %v2602_v3 }
 0x608   : > { %2685 = vmatprep.mubr.bf16.mxu0 %v2651_v38 }
 0x609   : > { %2686 = vmatmul.mubr.bf16.vlgmr.msra.gmra.mrb[36].mxu0 %v2650_v52 }
 0x6c0   : > { %v3476_v28 = vpop.f32.mrb[32].mxu1 }
 0x6c1   : > { %v3477_v20 = vpop.f32.mrb[33].mxu1 }
 0x6c2   : > { %v3478_v31 = vadd.f32 %v3477_v20, %v3476_v28  ;;  %v3479_v60 = vpop.f32.mrb[34].mxu1 }
 0x6c3   : > { %v3480_v1 = vpop.f32.mrb[35].mxu1 }
 0x6c4   : > { %v2496_v21 = vadd.f32 %v3478_v31, %v2495_v44  ;;  %v3481_v59 = vadd.f32 %v3480_v1, %v3479_v60 }
 0x6c6   : > { %v2499_v49 = vadd.f32 %v3481_v59, %v2498_v8  ;;  %v2502_v6 = vmul.f32 0.0625, %v2496_v21 }
 0x6c8   : > { %v2643_v18 = vpop.f32.mrb[36].mxu1  ;;  %v2503_v42 = vmul.f32 0.0625, %v2499_v49  ;;  %v2504_v58 = vmul.f32 %v2502_v6, %v5961_v37 }
 0x6c9   : > { %v3694_v43 = vpop.f32.mrb[37].mxu1 }
 0x6ca   : > { %v2646_v29 = vpop.f32.mrb[38].mxu1  ;;  %v2505_v48 = vmul.f32 %v2503_v42, %v5961_v37  ;;  %v2743_v14 = vmul.f32 %v2504_v58, %v5342_v4 }
 0x6cb   : > { %v2652_v50 = vpack.c.bf16 %v2646_v29, %v2643_v18  ;;  %v3695_v25 = vpop.f32.mrb[39].mxu1 }
 0x6cc   : > { %v2744_v32 = vmul.f32 %v2505_v48, %v5129_v54 }
 0x6cd   : > { %3703 = vmatmul.mubr.bf16.vlgmr.msra.gmra.mrb[40].mxu1 %v2652_v50 }
 0x6dc   : > { %v3504_v40 = vpop.f32.mrb[36].mxu0 }
 0x6dd   : > { %v3505_v24 = vpop.f32.mrb[37].mxu0 }
 0x6de   : > { %v3506_v63 = vadd.f32 %v3505_v24, %v3504_v40  ;;  %v3507_v41 = vpop.f32.mrb[38].mxu0 }
 0x6df   : > { %v3508_v56 = vpop.f32.mrb[39].mxu0 }
 0x6e0   : > { %v3509_v16 = vadd.f32 %v3508_v56, %v3507_v41 }
 0x7a0   : > { %v2728_v27 = vpop.f32.mrb[40].mxu1 }
 0x7a1   : > { %v2729_v30 = vadd.f32 %v3506_v63, %v2728_v27  ;;  %v3704_v12 = vpop.f32.mrb[41].mxu1 }
 0x7a2   : > { %v2731_v13 = vpop.f32.mrb[42].mxu1 }
 0x7a3   : > { %v2735_v22 = vmul.f32 0.0625, %v2729_v30  ;;  %v2732_v45 = vadd.f32 %v3509_v16, %v2731_v13  ;;  %v3705_v34 = vpop.f32.mrb[43].mxu1 }
 0x7a5   : > { %v2737_v23 = vmul.f32 %v2735_v22, %v5961_v37  ;;  %v2736_v35 = vmul.f32 0.0625, %v2732_v45 }
 0x7a7   : > { %v2745_v10 = vadd.f32 %v2743_v14, %v2737_v23  ;;  %v2738_v51 = vmul.f32 %v2736_v35, %v5961_v37 }
 0x7a9   : > { %2747 = vst [vmem:[%s201_s4] sm:$0xff] %v2745_v10  ;;  %v2746_v26 = vadd.f32 %v2744_v32, %v2738_v51 }
 0x7ab   : > { %2748 = vst [vmem:[%s201_s4 + $0x8] sm:$0xff] %v2746_v26 }
 0x7ac   : > { %4208 = shalt.err (!%p4205_p11)
}
 0x7ad   : > { %s4209_s7 = scalar_lea.hbm %s5673_s23, 256  ;;  %s4213_s17 = scalar_lea.hbm %s5718_s2, 2048 }
 0x7ae   : > { %p4210_p7 = scmp.ne.s32.totalorder %s5673_s23, %s4209_s7  ;;  %p4214_p1 = scmp.lt.u32.totalorder %s5673_s23, %s5718_s2 }
 0x7af   : > { %p4215_p3 = scmp.lt.u32.totalorder %s4213_s17, %s4209_s7  ;;  %p4217_p12 = scmp.lt.u32.totalorder %s4209_s7, %s5673_s23 }
 0x7b0   : > { %p4211_p8 = pnand %p4210_p7, %p5992_p0 }
 0x7b1   : > { %p4216_p6 = por %p4215_p3, %p4214_p1 }
 0x7b2   : > { %p4212_p13 = pneg %p4211_p8 }
 0x7b3   : > { %p4218_p2 = por %p4217_p12, %p4216_p6 }
 0x7b5   : > { %p4219_p9 = pnand %p4218_p2, %p4212_p13 }
 0x7b7   : > { %4222 = shalt.err (!%p4219_p9)
}
 0x7b8   : > { %s4279_s29 = smov 128   ;;  %s4280_s19 = smov 8  }
 0x7b9   : > { %4071 = dma.vmem_to_hbm [thread:$0]  (%p5992_p0), %s5666_s5, 256, %s5673_s23, %s2750_s25, %s4279_s29, %s4279_s29, %s4280_s19  }
 0x7ba PF: > { %p4085_p4 = scmp.ge.s32.totalorder %s4265_s12, 2  ;;  %s2778_s4 = sand.u32 1, %s4253_s9  }
 0x7bb   : > { %p5993_p5 = scmp.ne.s32.totalorder %s5822_s21, 0  ;;  %s2779_s8 = scalar_lea.sflag [#allocation8], %s2778_s4 }
 0x7bd   : > { %p4081_p10 = pnand %p4085_p4, %p5993_p5 }
 0x7bf   : > { %4248 = dma.done.wait (!%p4081_p10), %s2779_s8, 256  }
 0x7c0   : > { %4250 = vsyncadd (!%p4081_p10), %s2779_s8, 4294967040  ;;  %p18_p11 = scmp.ge.s32.totalorder %s4321_s15, 10   ;;  %s5994_s9 = smov %s4257_s10 }
 0x7c1   : > { %s5995_s10 = smov %s4261_s11  ;;  %s5996_s11 = smov %s4333_s18 }
 0x7c2   : > { %s5997_s12 = smov %s4321_s15  ;;  %20 = sbr.rel (!%p18_p11) target bundleno = 7 (0x7), region = 86 }
 0x7c9   :  { %2784 = vsyncpa [#allocation7], 1 }
 0x7ca   :  { %2786 = vsyncpa [#allocation7 + $0x1], 1 }
 0x7cb   :  { %2787 = vsyncpa [#allocation10], 1 }
 0x7cc   :  { %2789 = vsyncpa [#allocation10 + $0x1], 1 }
 0x7cd   :  { %2790 = vsyncpa [#allocation8], 1 }
 0x7ce   :  { %2792 = vsyncpa [#allocation8 + $0x1], 1 }

</bundles_post_ra>
